<compile_context>
chip_gen: v7x
topology: tpu7x:2x2x1
jax: 0.10.0
libtpu: 0.0.40
codegen_flags: <defaults>
</compile_context>

<pallas_src>
import math
import functools

import jax
import jax.numpy as jnp
from jax.experimental import pallas as pl
from jax.experimental.pallas import tpu as pltpu

EPS = 1e-6
NEG_INF = -1e9


def _vmem_limit_bytes():
    """Generation-aware VMEM limit: ~75% of physical capacity."""
    cap = 128 * 1024 * 1024
    try:
        cap = int(getattr(pltpu.get_tpu_info(), "vmem_capacity_bytes", cap))
    except Exception:
        pass
    return int(cap * 3 // 4)        # v5e/v6e -> 96 MiB, v7x -> 48 MiB


_VMEM_LIMIT = _vmem_limit_bytes()


def _tile_m(M, cap=512):
    """Largest multiple-of-8 tile <= cap that divides M, else the full M."""
    if M <= cap:
        return M
    start = cap - (cap % 8)
    for t in range(start, 7, -8):
        if M % t == 0:
            return t
    return M                        # full block is always layout-legal


def _heads_per_block(n_heads, dk):
    """Smallest head group whose (S, 3*g*dk) qkv slab is lane-aligned."""
    for g in range(1, n_heads):
        if n_heads % g == 0 and (3 * g * dk) % 128 == 0:
            return g
    return n_heads                  # fall back to all heads (full last dim)


def _layernorm_f32(x, alpha, beta):
    # Matches the annotated-transformer LayerNorm exactly:
    # unbiased std (N-1 denominator) and division by (std + eps).
    x = x.astype(jnp.float32)
    d = x.shape[-1]
    mean = jnp.mean(x, axis=-1, keepdims=True)
    var = jnp.sum((x - mean) ** 2, axis=-1, keepdims=True) / (d - 1)
    std = jnp.sqrt(var)
    return alpha * (x - mean) / (std + EPS) + beta


# ----------------------- fused LayerNorm + QKV projection --------------------

def _ln_qkv_kernel(x_ref, a_ref, b_ref, w_ref, bias_ref, o_ref):
    xn = _layernorm_f32(x_ref[...], a_ref[...], b_ref[...])       # f32 stats
    y = jnp.dot(xn.astype(jnp.bfloat16), w_ref[...],              # bf16 MXU
                preferred_element_type=jnp.float32) + bias_ref[...]
    o_ref[...] = y.astype(o_ref.dtype)                            # bf16 out


def ln_qkv(x2d, alpha, beta, wqkv, bqkv, *, tile_m=512):
    M, D = x2d.shape
    D3 = wqkv.shape[1]
    tm = _tile_m(M, tile_m)
    cost = pl.CostEstimate(
        flops=2 * M * D * D3,
        transcendentals=0,
        bytes_accessed=M * D * 4 + M * D3 * 2 + D * D3 * 2 + (D3 + 2 * D) * 4)
    return pl.pallas_call(
        _ln_qkv_kernel,
        out_shape=jax.ShapeDtypeStruct((M, D3), jnp.bfloat16),
        grid=(M // tm,),
        in_specs=[
            pl.BlockSpec((tm, D), lambda i: (i, 0)),
            pl.BlockSpec((1, D), lambda i: (0, 0)),
            pl.BlockSpec((1, D), lambda i: (0, 0)),
            pl.BlockSpec((D, D3), lambda i: (0, 0)),
            pl.BlockSpec((1, D3), lambda i: (0, 0)),
        ],
        out_specs=pl.BlockSpec((tm, D3), lambda i: (i, 0)),
        compiler_params=pltpu.CompilerParams(
            dimension_semantics=("parallel",),
            vmem_limit_bytes=_VMEM_LIMIT),
        cost_estimate=cost,
    )(x2d, alpha, beta, wqkv, bqkv)


# ------- multi-head attention + output projection + residual (fused) ---------

def _attention_kernel(res_ref, qkv_ref, m_ref, wo_ref, bo_ref, o_ref, acc_ref,
                      *, heads_per_block, dk, scale):
    g = pl.program_id(1)

    @pl.when(g == 0)
    def _():
        # accumulator starts as residual + output-projection bias (added once)
        acc_ref[...] = res_ref[0].astype(jnp.float32) + bo_ref[...]

    qkv = qkv_ref[0]                                   # (S, 3*gD) bf16
    keep = m_ref[0] != 0.0                             # (1, S): 1 = keep
    gD = heads_per_block * dk
    q_grp = qkv[:, :gD]
    k_grp = qkv[:, gD:2 * gD]
    v_grp = qkv[:, 2 * gD:3 * gD]

    ctx = []
    for j in range(heads_per_block):                   # static unroll over group
        q = q_grp[:, j * dk:(j + 1) * dk]
        k = k_grp[:, j * dk:(j + 1) * dk]
        v = v_grp[:, j * dk:(j + 1) * dk]
        # scores = (q @ k^T) / sqrt(dk), contracting on dim 1 of both operands
        s = jax.lax.dot_general(
            q, k, dimension_numbers=(((1,), (1,)), ((), ())),
            preferred_element_type=jnp.float32) * scale            # (S, S) f32
        s = jnp.where(keep, s, NEG_INF)                # masked_fill(mask==0)
        s = s - jnp.max(s, axis=-1, keepdims=True)     # f32 softmax stats
        e = jnp.exp(s)
        p = e * pl.reciprocal(jnp.sum(e, axis=-1, keepdims=True), approx=True)
        ctx.append(jnp.dot(p.astype(jnp.bfloat16), v,
                           preferred_element_type=jnp.float32))    # (S, dk)

    ctx_g = ctx[0] if heads_per_block == 1 else jnp.concatenate(ctx, axis=-1)
    # fold this head group's contribution through its rows of Wo
    acc_ref[...] += jnp.dot(ctx_g.astype(jnp.bfloat16), wo_ref[...],
                            preferred_element_type=jnp.float32)

    @pl.when(g == pl.num_programs(1) - 1)
    def _():
        o_ref[0] = acc_ref[...].astype(o_ref.dtype)    # single bf16 store


def attention_residual(res3d, qkv3d, mask, wo, bo, n_heads):
    # res3d: (B, S, D) f32 residual stream; qkv3d: (B, S, 3D) bf16,
    # head-group-contiguous layout; mask: (B, 1, S) float (1 = keep).
    B, S, D = res3d.shape
    dk = D // n_heads
    hpb = _heads_per_block(n_heads, dk)
    n_grp = n_heads // hpb
    gD = hpb * dk
    kernel = functools.partial(_attention_kernel, heads_per_block=hpb, dk=dk,
                               scale=1.0 / math.sqrt(dk))
    cost = pl.CostEstimate(
        flops=B * (4 * n_heads * S * S * dk + 2 * S * D * D),
        transcendentals=B * n_heads * S * S,
        bytes_accessed=B * S * 3 * D * 2 + B * S * D * (4 + 2)
                       + D * D * 2 + B * S * 4)
    return pl.pallas_call(
        kernel,
        out_shape=jax.ShapeDtypeStruct((B, S, D), jnp.bfloat16),
        grid=(B, n_grp),
        in_specs=[
            pl.BlockSpec((1, S, D), lambda b, g: (b, 0, 0)),       # residual
            pl.BlockSpec((1, S, 3 * gD), lambda b, g: (b, 0, g)),  # qkv group
            pl.BlockSpec((1, 1, S), lambda b, g: (b, 0, 0)),       # mask
            pl.BlockSpec((gD, D), lambda b, g: (g, 0)),            # Wo rows
            pl.BlockSpec((1, D), lambda b, g: (0, 0)),             # bo
        ],
        out_specs=pl.BlockSpec((1, S, D), lambda b, g: (b, 0, 0)),
        scratch_shapes=[pltpu.VMEM((S, D), jnp.float32)],
        compiler_params=pltpu.CompilerParams(
            dimension_semantics=("parallel", "arbitrary"),
            vmem_limit_bytes=_VMEM_LIMIT),
        cost_estimate=cost,
    )(res3d, qkv3d, mask, wo, bo)


# ---------------- fused LayerNorm + FFN + residual add ------------------------

def _ln_ffn_residual_kernel(x_ref, a_ref, b_ref, w1_ref, b1_ref,
                            w2_ref, b2_ref, o_ref):
    x32 = x_ref[...].astype(jnp.float32)               # (tm, D), residual in f32
    xn = _layernorm_f32(x32, a_ref[...], b_ref[...])
    h = jnp.dot(xn.astype(jnp.bfloat16), w1_ref[...],
                preferred_element_type=jnp.float32) + b1_ref[...]
    h = jnp.maximum(h, 0.0)                            # ReLU
    o_ref[...] = x32 + jnp.dot(h.astype(jnp.bfloat16), w2_ref[...],
                               preferred_element_type=jnp.float32) + b2_ref[...]


def ln_ffn_residual(x2d, alpha, beta, w1, b1, w2, b2, *, tile_m=512):
    M, D = x2d.shape
    Dff = w1.shape[1]
    tm = _tile_m(M, tile_m)
    cost = pl.CostEstimate(
        flops=4 * M * D * Dff,
        transcendentals=0,
        bytes_accessed=M * D * (2 + 4) + 2 * D * Dff * 2 + (Dff + 3 * D) * 4)
    return pl.pallas_call(
        _ln_ffn_residual_kernel,
        out_shape=jax.ShapeDtypeStruct((M, D), jnp.float32),
        grid=(M // tm,),
        in_specs=[
            pl.BlockSpec((tm, D), lambda i: (i, 0)),
            pl.BlockSpec((1, D), lambda i: (0, 0)),
            pl.BlockSpec((1, D), lambda i: (0, 0)),
            pl.BlockSpec((D, Dff), lambda i: (0, 0)),
            pl.BlockSpec((1, Dff), lambda i: (0, 0)),
            pl.BlockSpec((Dff, D), lambda i: (0, 0)),
            pl.BlockSpec((1, D), lambda i: (0, 0)),
        ],
        out_specs=pl.BlockSpec((tm, D), lambda i: (i, 0)),
        compiler_params=pltpu.CompilerParams(
            dimension_semantics=("parallel",),
            vmem_limit_bytes=_VMEM_LIMIT),
        cost_estimate=cost,
    )(x2d, alpha, beta, w1, b1, w2, b2)


# --------------------------- EncoderLayer forward ----------------------------

def encoder_layer(x, mask, p, n_heads):
    """x: (B, S, D) f32; mask: (B, 1, S) float; returns (B, S, D) f32."""
    B, S, D = x.shape
    M = B * S
    x2 = x.reshape(M, D)

    # Sublayer 1: x + dropout(self_attn(norm(x)))   (dropout = identity, eval)
    qkv = ln_qkv(x2, p["ln1_a"], p["ln1_b"], p["wqkv"], p["bqkv"])   # (M,3D) bf16
    x_attn = attention_residual(x, qkv.reshape(B, S, 3 * D), mask,
                                p["wo"], p["bo"], n_heads)           # (B,S,D) bf16

    # Sublayer 2: x + dropout(feed_forward(norm(x)))
    y = ln_ffn_residual(x_attn.reshape(M, D), p["ln2_a"], p["ln2_b"],
                        p["w1"], p["b1"], p["w2"], p["b2"])          # (M,D) f32
    return y.reshape(B, S, D)


# --------------------------- deterministic params ----------------------------

def init_params(key, D, Dff, n_heads):
    def dense(k, din, dout):
        k1, k2 = jax.random.split(k)
        lim = 1.0 / math.sqrt(din)
        w = jax.random.uniform(k1, (din, dout), jnp.float32, -lim, lim)
        b = jax.random.uniform(k2, (dout,), jnp.float32, -lim, lim)
        return w, b

    key, *ks = jax.random.split(key, 7)
    wq, bq = dense(ks[0], D, D)
    wk, bk = dense(ks[1], D, D)
    wv, bv = dense(ks[2], D, D)
    wo, bo = dense(ks[3], D, D)
    w1, b1 = dense(ks[4], D, Dff)
    w2, b2 = dense(ks[5], Dff, D)

    # fuse Q/K/V weights into one (D, 3D) matrix with a head-GROUP-contiguous
    # column layout: [grp0: q|k|v][grp1: q|k|v]... so the attention kernel can
    # slice one (S, 3*groupD) slab per grid step.
    dk = D // n_heads
    hpb = _heads_per_block(n_heads, dk)
    gD = hpb * dk
    w_parts, b_parts = [], []
    for g in range(n_heads // hpb):
        sl = slice(g * gD, (g + 1) * gD)
        w_parts += [wq[:, sl], wk[:, sl], wv[:, sl]]
        b_parts += [bq[sl], bk[sl], bv[sl]]
    wqkv = jnp.concatenate(w_parts, axis=1)
    bqkv = jnp.concatenate(b_parts)

    return dict(
        # weights pre-transposed (Din, Dout), bf16 for the MXU
        wqkv=wqkv.astype(jnp.bfloat16), bqkv=bqkv.reshape(1, 3 * D),
        wo=wo.astype(jnp.bfloat16), bo=bo.reshape(1, D),
        w1=w1.astype(jnp.bfloat16), b1=b1.reshape(1, Dff),
        w2=w2.astype(jnp.bfloat16), b2=b2.reshape(1, D),
        ln1_a=jnp.ones((1, D), jnp.float32), ln1_b=jnp.zeros((1, D), jnp.float32),
        ln2_a=jnp.ones((1, D), jnp.float32), ln2_b=jnp.zeros((1, D), jnp.float32),
    )


if __name__ == "__main__":
    B, S, D, H, Dff = 2, 8, 32, 4, 64
    key = jax.random.PRNGKey(0)
    kx, kp = jax.random.split(key)
    x = jax.random.normal(kx, (B, S, D), jnp.float32)
    mask = jnp.ones((B, 1, S), jnp.float32)      # src mask: 1 = keep (no padding)
    params = init_params(kp, D, Dff, H)

    fwd = jax.jit(functools.partial(encoder_layer, n_heads=H))
    out = fwd(x, mask, params)
    jax.block_until_ready(out)
    assert out.shape == (B, S, D) and out.dtype == jnp.float32
    assert bool(jnp.all(jnp.isfinite(out)))
    print("KERNEL_OK")
</pallas_src>

<mosaic_0001>
module attributes {stable_mosaic.version = 11 : i64} {
  func.func @_attention_kernel(%arg0: i32, %arg1: i32, %arg2: memref<1x8x32xf32, #tpu.memory_space<vmem>>, %arg3: memref<1x8x96xbf16, #tpu.memory_space<vmem>>, %arg4: memref<1x1x8xf32, #tpu.memory_space<vmem>>, %arg5: memref<32x32xbf16, #tpu.memory_space<vmem>>, %arg6: memref<1x32xf32, #tpu.memory_space<vmem>>, %arg7: memref<1x8x32xbf16, #tpu.memory_space<vmem>>, %arg8: memref<8x32xf32, #tpu.memory_space<vmem>>) attributes {dimension_semantics = [#tpu.dimension_semantics<parallel>, #tpu.dimension_semantics<arbitrary>], iteration_bounds = array<i64: 2, 1>, scalar_prefetch = 0 : i64, scratch_operands = 1 : i64, tpu.core_type = #tpu.core_type<tc>, window_params = [{transform_indices = @transform_0, window_bounds = array<i64: 1, 8, 32>}, {transform_indices = @transform_1, window_bounds = array<i64: 1, 8, 96>}, {transform_indices = @transform_2, window_bounds = array<i64: 1, 1, 8>}, {transform_indices = @transform_3, window_bounds = array<i64: 32, 32>}, {pipeline_mode = #tpu.pipeline_mode<synchronous>, transform_indices = @transform_4, window_bounds = array<i64: 1, 32>}, {transform_indices = @transform_5, window_bounds = array<i64: 1, 8, 32>}]} {
    %c0_i32 = arith.constant 0 : i32
    %0 = arith.cmpi eq, %arg1, %c0_i32 : i32
    %1 = arith.extui %0 : i1 to i32
    %c0_i32_0 = arith.constant 0 : i32
    %2 = arith.cmpi ne, %1, %c0_i32_0 : i32
    scf.if %2 {
      %c0_39 = arith.constant 0 : index
      %c0_40 = arith.constant 0 : index
      %c0_41 = arith.constant 0 : index
      %110 = vector.load %arg2[%c0_39, %c0_40, %c0_41] : memref<1x8x32xf32, #tpu.memory_space<vmem>>, vector<1x8x32xf32>
      %111 = vector.shape_cast %110 : vector<1x8x32xf32> to vector<8x32xf32>
      %c0_42 = arith.constant 0 : index
      %c0_43 = arith.constant 0 : index
      %112 = vector.load %arg6[%c0_42, %c0_43] : memref<1x32xf32, #tpu.memory_space<vmem>>, vector<1x32xf32>
      %113 = vector.broadcast %112 : vector<1x32xf32> to vector<8x32xf32>
      %114 = arith.addf %111, %113 : vector<8x32xf32>
      %c0_44 = arith.constant 0 : index
      %c0_45 = arith.constant 0 : index
      %115 = vector.load %arg8[%c0_44, %c0_45] : memref<8x32xf32, #tpu.memory_space<vmem>>, vector<8x32xf32>
      tpu.vector_store %arg8[%c0_44, %c0_45], %114 {strides = array<i32>} : memref<8x32xf32, #tpu.memory_space<vmem>>, vector<8x32xf32>,
    } else {
    }
    %c0 = arith.constant 0 : index
    %c0_1 = arith.constant 0 : index
    %c0_2 = arith.constant 0 : index
    %3 = vector.load %arg3[%c0, %c0_1, %c0_2] : memref<1x8x96xbf16, #tpu.memory_space<vmem>>, vector<1x8x96xbf16>
    %4 = vector.shape_cast %3 : vector<1x8x96xbf16> to vector<8x96xbf16>
    %c0_3 = arith.constant 0 : index
    %c0_4 = arith.constant 0 : index
    %c0_5 = arith.constant 0 : index
    %5 = vector.load %arg4[%c0_3, %c0_4, %c0_5] : memref<1x1x8xf32, #tpu.memory_space<vmem>>, vector<1x1x8xf32>
    %6 = vector.shape_cast %5 : vector<1x1x8xf32> to vector<1x8xf32>
    %cst = arith.constant 0.000000e+00 : f32
    %7 = vector.broadcast %cst : f32 to vector<1x8xf32>
    %8 = arith.cmpf one, %6, %7 : vector<1x8xf32>
    %9 = vector.extract_strided_slice %4 {offsets = [0, 0], sizes = [8, 32], strides = [1, 1]} : vector<8x96xbf16> to vector<8x32xbf16>
    %10 = vector.extract_strided_slice %4 {offsets = [0, 32], sizes = [8, 32], strides = [1, 1]} : vector<8x96xbf16> to vector<8x32xbf16>
    %11 = vector.extract_strided_slice %4 {offsets = [0, 64], sizes = [8, 32], strides = [1, 1]} : vector<8x96xbf16> to vector<8x32xbf16>
    %12 = vector.extract_strided_slice %9 {offsets = [0, 0], sizes = [8, 8], strides = [1, 1]} : vector<8x32xbf16> to vector<8x8xbf16>
    %13 = vector.extract_strided_slice %10 {offsets = [0, 0], sizes = [8, 8], strides = [1, 1]} : vector<8x32xbf16> to vector<8x8xbf16>
    %14 = vector.extract_strided_slice %11 {offsets = [0, 0], sizes = [8, 8], strides = [1, 1]} : vector<8x32xbf16> to vector<8x8xbf16>
    %cst_6 = arith.constant dense<0.000000e+00> : vector<8x8xf32>
    %15 = tpu.matmul %12, %13, %cst_6 {dimension_numbers = #tpu.dot_dimension_numbers<[1], [1], [0], [0], [0, 0, 1, 0], [], []>} : vector<8x8xbf16>, vector<8x8xbf16>, vector<8x8xf32> -> vector<8x8xf32>
    %cst_7 = arith.constant 0.353553385 : f32
    %16 = vector.broadcast %cst_7 : f32 to vector<8x8xf32>
    %17 = arith.mulf %15, %16 : vector<8x8xf32>
    %cst_8 = arith.constant -1.000000e+09 : f32
    %18 = vector.shape_cast %8 : vector<1x8xi1> to vector<1x8xi1>
    %19 = vector.broadcast %18 : vector<1x8xi1> to vector<8x8xi1>
    %20 = vector.broadcast %cst_8 : f32 to vector<8x8xf32>
    %21 = arith.select %19, %17, %20 : vector<8x8xi1>, vector<8x8xf32>
    %cst_9 = arith.constant dense<0xFF800000> : vector<8xf32>
    %22 = vector.multi_reduction <maximumf>, %21, %cst_9 [1] : vector<8x8xf32> to vector<8xf32>
    %23 = vector.shape_cast %22 : vector<8xf32> to vector<8x1xf32>
    %24 = vector.broadcast %23 : vector<8x1xf32> to vector<8x8xf32>
    %25 = arith.subf %21, %24 : vector<8x8xf32>
    %26 = math.exp %25 : vector<8x8xf32>
    %cst_10 = arith.constant dense<0.000000e+00> : vector<8xf32>
    %27 = vector.multi_reduction <add>, %26, %cst_10 [1] : vector<8x8xf32> to vector<8xf32>
    %28 = vector.shape_cast %27 : vector<8xf32> to vector<8x1xf32>
    %29 = tpu.reciprocal %28 {approx = true} : vector<8x1xf32> -> vector<8x1xf32>
    %30 = vector.broadcast %29 : vector<8x1xf32> to vector<8x8xf32>
    %31 = arith.mulf %26, %30 : vector<8x8xf32>
    %32 = arith.truncf %31 : vector<8x8xf32> to vector<8x8xbf16>
    %cst_11 = arith.constant dense<0.000000e+00> : vector<8x8xf32>
    %33 = tpu.matmul %32, %14, %cst_11 {dimension_numbers = #tpu.dot_dimension_numbers<[1], [0], [0], [1], [0, 0, 1, 1], [], []>} : vector<8x8xbf16>, vector<8x8xbf16>, vector<8x8xf32> -> vector<8x8xf32>
    %34 = vector.extract_strided_slice %9 {offsets = [0, 8], sizes = [8, 8], strides = [1, 1]} : vector<8x32xbf16> to vector<8x8xbf16>
    %35 = vector.extract_strided_slice %10 {offsets = [0, 8], sizes = [8, 8], strides = [1, 1]} : vector<8x32xbf16> to vector<8x8xbf16>
    %36 = vector.extract_strided_slice %11 {offsets = [0, 8], sizes = [8, 8], strides = [1, 1]} : vector<8x32xbf16> to vector<8x8xbf16>
    %cst_12 = arith.constant dense<0.000000e+00> : vector<8x8xf32>
    %37 = tpu.matmul %34, %35, %cst_12 {dimension_numbers = #tpu.dot_dimension_numbers<[1], [1], [0], [0], [0, 0, 1, 0], [], []>} : vector<8x8xbf16>, vector<8x8xbf16>, vector<8x8xf32> -> vector<8x8xf32>
    %cst_13 = arith.constant 0.353553385 : f32
    %38 = vector.broadcast %cst_13 : f32 to vector<8x8xf32>
    %39 = arith.mulf %37, %38 : vector<8x8xf32>
    %cst_14 = arith.constant -1.000000e+09 : f32
    %40 = vector.shape_cast %8 : vector<1x8xi1> to vector<1x8xi1>
    %41 = vector.broadcast %40 : vector<1x8xi1> to vector<8x8xi1>
    %42 = vector.broadcast %cst_14 : f32 to vector<8x8xf32>
    %43 = arith.select %41, %39, %42 : vector<8x8xi1>, vector<8x8xf32>
    %cst_15 = arith.constant dense<0xFF800000> : vector<8xf32>
    %44 = vector.multi_reduction <maximumf>, %43, %cst_15 [1] : vector<8x8xf32> to vector<8xf32>
    %45 = vector.shape_cast %44 : vector<8xf32> to vector<8x1xf32>
    %46 = vector.broadcast %45 : vector<8x1xf32> to vector<8x8xf32>
    %47 = arith.subf %43, %46 : vector<8x8xf32>
    %48 = math.exp %47 : vector<8x8xf32>
    %cst_16 = arith.constant dense<0.000000e+00> : vector<8xf32>
    %49 = vector.multi_reduction <add>, %48, %cst_16 [1] : vector<8x8xf32> to vector<8xf32>
    %50 = vector.shape_cast %49 : vector<8xf32> to vector<8x1xf32>
    %51 = tpu.reciprocal %50 {approx = true} : vector<8x1xf32> -> vector<8x1xf32>
    %52 = vector.broadcast %51 : vector<8x1xf32> to vector<8x8xf32>
    %53 = arith.mulf %48, %52 : vector<8x8xf32>
    %54 = arith.truncf %53 : vector<8x8xf32> to vector<8x8xbf16>
    %cst_17 = arith.constant dense<0.000000e+00> : vector<8x8xf32>
    %55 = tpu.matmul %54, %36, %cst_17 {dimension_numbers = #tpu.dot_dimension_numbers<[1], [0], [0], [1], [0, 0, 1, 1], [], []>} : vector<8x8xbf16>, vector<8x8xbf16>, vector<8x8xf32> -> vector<8x8xf32>
    %56 = vector.extract_strided_slice %9 {offsets = [0, 16], sizes = [8, 8], strides = [1, 1]} : vector<8x32xbf16> to vector<8x8xbf16>
    %57 = vector.extract_strided_slice %10 {offsets = [0, 16], sizes = [8, 8], strides = [1, 1]} : vector<8x32xbf16> to vector<8x8xbf16>
    %58 = vector.extract_strided_slice %11 {offsets = [0, 16], sizes = [8, 8], strides = [1, 1]} : vector<8x32xbf16> to vector<8x8xbf16>
    %cst_18 = arith.constant dense<0.000000e+00> : vector<8x8xf32>
    %59 = tpu.matmul %56, %57, %cst_18 {dimension_numbers = #tpu.dot_dimension_numbers<[1], [1], [0], [0], [0, 0, 1, 0], [], []>} : vector<8x8xbf16>, vector<8x8xbf16>, vector<8x8xf32> -> vector<8x8xf32>
    %cst_19 = arith.constant 0.353553385 : f32
    %60 = vector.broadcast %cst_19 : f32 to vector<8x8xf32>
    %61 = arith.mulf %59, %60 : vector<8x8xf32>
    %cst_20 = arith.constant -1.000000e+09 : f32
    %62 = vector.shape_cast %8 : vector<1x8xi1> to vector<1x8xi1>
    %63 = vector.broadcast %62 : vector<1x8xi1> to vector<8x8xi1>
    %64 = vector.broadcast %cst_20 : f32 to vector<8x8xf32>
    %65 = arith.select %63, %61, %64 : vector<8x8xi1>, vector<8x8xf32>
    %cst_21 = arith.constant dense<0xFF800000> : vector<8xf32>
    %66 = vector.multi_reduction <maximumf>, %65, %cst_21 [1] : vector<8x8xf32> to vector<8xf32>
    %67 = vector.shape_cast %66 : vector<8xf32> to vector<8x1xf32>
    %68 = vector.broadcast %67 : vector<8x1xf32> to vector<8x8xf32>
    %69 = arith.subf %65, %68 : vector<8x8xf32>
    %70 = math.exp %69 : vector<8x8xf32>
    %cst_22 = arith.constant dense<0.000000e+00> : vector<8xf32>
    %71 = vector.multi_reduction <add>, %70, %cst_22 [1] : vector<8x8xf32> to vector<8xf32>
    %72 = vector.shape_cast %71 : vector<8xf32> to vector<8x1xf32>
    %73 = tpu.reciprocal %72 {approx = true} : vector<8x1xf32> -> vector<8x1xf32>
    %74 = vector.broadcast %73 : vector<8x1xf32> to vector<8x8xf32>
    %75 = arith.mulf %70, %74 : vector<8x8xf32>
    %76 = arith.truncf %75 : vector<8x8xf32> to vector<8x8xbf16>
    %cst_23 = arith.constant dense<0.000000e+00> : vector<8x8xf32>
    %77 = tpu.matmul %76, %58, %cst_23 {dimension_numbers = #tpu.dot_dimension_numbers<[1], [0], [0], [1], [0, 0, 1, 1], [], []>} : vector<8x8xbf16>, vector<8x8xbf16>, vector<8x8xf32> -> vector<8x8xf32>
    %78 = vector.extract_strided_slice %9 {offsets = [0, 24], sizes = [8, 8], strides = [1, 1]} : vector<8x32xbf16> to vector<8x8xbf16>
    %79 = vector.extract_strided_slice %10 {offsets = [0, 24], sizes = [8, 8], strides = [1, 1]} : vector<8x32xbf16> to vector<8x8xbf16>
    %80 = vector.extract_strided_slice %11 {offsets = [0, 24], sizes = [8, 8], strides = [1, 1]} : vector<8x32xbf16> to vector<8x8xbf16>
    %cst_24 = arith.constant dense<0.000000e+00> : vector<8x8xf32>
    %81 = tpu.matmul %78, %79, %cst_24 {dimension_numbers = #tpu.dot_dimension_numbers<[1], [1], [0], [0], [0, 0, 1, 0], [], []>} : vector<8x8xbf16>, vector<8x8xbf16>, vector<8x8xf32> -> vector<8x8xf32>
    %cst_25 = arith.constant 0.353553385 : f32
    %82 = vector.broadcast %cst_25 : f32 to vector<8x8xf32>
    %83 = arith.mulf %81, %82 : vector<8x8xf32>
    %cst_26 = arith.constant -1.000000e+09 : f32
    %84 = vector.shape_cast %8 : vector<1x8xi1> to vector<1x8xi1>
    %85 = vector.broadcast %84 : vector<1x8xi1> to vector<8x8xi1>
    %86 = vector.broadcast %cst_26 : f32 to vector<8x8xf32>
    %87 = arith.select %85, %83, %86 : vector<8x8xi1>, vector<8x8xf32>
    %cst_27 = arith.constant dense<0xFF800000> : vector<8xf32>
    %88 = vector.multi_reduction <maximumf>, %87, %cst_27 [1] : vector<8x8xf32> to vector<8xf32>
    %89 = vector.shape_cast %88 : vector<8xf32> to vector<8x1xf32>
    %90 = vector.broadcast %89 : vector<8x1xf32> to vector<8x8xf32>
    %91 = arith.subf %87, %90 : vector<8x8xf32>
    %92 = math.exp %91 : vector<8x8xf32>
    %cst_28 = arith.constant dense<0.000000e+00> : vector<8xf32>
    %93 = vector.multi_reduction <add>, %92, %cst_28 [1] : vector<8x8xf32> to vector<8xf32>
    %94 = vector.shape_cast %93 : vector<8xf32> to vector<8x1xf32>
    %95 = tpu.reciprocal %94 {approx = true} : vector<8x1xf32> -> vector<8x1xf32>
    %96 = vector.broadcast %95 : vector<8x1xf32> to vector<8x8xf32>
    %97 = arith.mulf %92, %96 : vector<8x8xf32>
    %98 = arith.truncf %97 : vector<8x8xf32> to vector<8x8xbf16>
    %cst_29 = arith.constant dense<0.000000e+00> : vector<8x8xf32>
    %99 = tpu.matmul %98, %80, %cst_29 {dimension_numbers = #tpu.dot_dimension_numbers<[1], [0], [0], [1], [0, 0, 1, 1], [], []>} : vector<8x8xbf16>, vector<8x8xbf16>, vector<8x8xf32> -> vector<8x8xf32>
    %100 = tpu.concatenate %33, %55, %77, %99 in 1 : vector<8x8xf32>, vector<8x8xf32>, vector<8x8xf32>, vector<8x8xf32> -> vector<8x32xf32>
    %c0_30 = arith.constant 0 : index
    %c0_31 = arith.constant 0 : index
    %101 = vector.load %arg8[%c0_30, %c0_31] : memref<8x32xf32, #tpu.memory_space<vmem>>, vector<8x32xf32>
    %102 = arith.truncf %100 : vector<8x32xf32> to vector<8x32xbf16>
    %c0_32 = arith.constant 0 : index
    %c0_33 = arith.constant 0 : index
    %103 = vector.load %arg5[%c0_32, %c0_33] : memref<32x32xbf16, #tpu.memory_space<vmem>>, vector<32x32xbf16>
    %cst_34 = arith.constant dense<0.000000e+00> : vector<8x32xf32>
    %104 = tpu.matmul %102, %103, %cst_34 {dimension_numbers = #tpu.dot_dimension_numbers<[1], [0], [0], [1], [0, 0, 1, 1], [], []>} : vector<8x32xbf16>, vector<32x32xbf16>, vector<8x32xf32> -> vector<8x32xf32>
    %105 = arith.addf %101, %104 : vector<8x32xf32>
    %c0_35 = arith.constant 0 : index
    %c0_36 = arith.constant 0 : index
    %106 = vector.load %arg8[%c0_35, %c0_36] : memref<8x32xf32, #tpu.memory_space<vmem>>, vector<8x32xf32>
    tpu.vector_store %arg8[%c0_35, %c0_36], %105 {strides = array<i32>} : memref<8x32xf32, #tpu.memory_space<vmem>>, vector<8x32xf32>,
    %c0_i32_37 = arith.constant 0 : i32
    %107 = arith.cmpi eq, %arg1, %c0_i32_37 : i32
    %108 = arith.extui %107 : i1 to i32
    %c0_i32_38 = arith.constant 0 : i32
    %109 = arith.cmpi ne, %108, %c0_i32_38 : i32
    scf.if %109 {
      %c0_39 = arith.constant 0 : index
      %c0_40 = arith.constant 0 : index
      %110 = vector.load %arg8[%c0_39, %c0_40] : memref<8x32xf32, #tpu.memory_space<vmem>>, vector<8x32xf32>
      %111 = arith.truncf %110 : vector<8x32xf32> to vector<8x32xbf16>
      %c0_41 = arith.constant 0 : index
      %c0_42 = arith.constant 0 : index
      %c0_43 = arith.constant 0 : index
      %112 = vector.load %arg7[%c0_41, %c0_42, %c0_43] : memref<1x8x32xbf16, #tpu.memory_space<vmem>>, vector<1x8x32xbf16>
      %113 = vector.shape_cast %112 : vector<1x8x32xbf16> to vector<8x32xbf16>
      %114 = vector.shape_cast %111 : vector<8x32xbf16> to vector<1x8x32xbf16>
      tpu.vector_store %arg7[%c0_41, %c0_42, %c0_43], %114 {strides = array<i32>} : memref<1x8x32xbf16, #tpu.memory_space<vmem>>, vector<1x8x32xbf16>,
    } else {
    }
    return
  }
  func.func @transform_0(%arg0: i32, %arg1: i32) -> (i32, i32, i32) {
    %c0_i32 = arith.constant 0 : i32
    %c0_i32_0 = arith.constant 0 : i32
    %c0_i32_1 = arith.constant 0 : i32
    return %arg0, %c0_i32, %c0_i32_0 : i32, i32, i32
  }
  func.func @transform_1(%arg0: i32, %arg1: i32) -> (i32, i32, i32) {
    %c0_i32 = arith.constant 0 : i32
    %c0_i32_0 = arith.constant 0 : i32
    return %arg0, %c0_i32, %arg1 : i32, i32, i32
  }
  func.func @transform_2(%arg0: i32, %arg1: i32) -> (i32, i32, i32) {
    %c0_i32 = arith.constant 0 : i32
    %c0_i32_0 = arith.constant 0 : i32
    %c0_i32_1 = arith.constant 0 : i32
    return %arg0, %c0_i32, %c0_i32_0 : i32, i32, i32
  }
  func.func @transform_3(%arg0: i32, %arg1: i32) -> (i32, i32) {
    %c0_i32 = arith.constant 0 : i32
    %c0_i32_0 = arith.constant 0 : i32
    return %arg1, %c0_i32 : i32, i32
  }
  func.func @transform_4(%arg0: i32, %arg1: i32) -> (i32, i32) {
    %c0_i32 = arith.constant 0 : i32
    %c0_i32_0 = arith.constant 0 : i32
    %c0_i32_1 = arith.constant 0 : i32
    return %c0_i32, %c0_i32_0 : i32, i32
  }
  func.func @transform_5(%arg0: i32, %arg1: i32) -> (i32, i32, i32) {
    %c0_i32 = arith.constant 0 : i32
    %c0_i32_0 = arith.constant 0 : i32
    %c0_i32_1 = arith.constant 0 : i32
    return %arg0, %c0_i32, %c0_i32_0 : i32, i32, i32
  }
}

module attributes {stable_mosaic.version = 11 : i64} {
  func.func @_ln_qkv_kernel(%arg0: i32, %arg1: memref<16x32xf32, #tpu.memory_space<vmem>>, %arg2: memref<1x32xf32, #tpu.memory_space<vmem>>, %arg3: memref<1x32xf32, #tpu.memory_space<vmem>>, %arg4: memref<32x96xbf16, #tpu.memory_space<vmem>>, %arg5: memref<1x96xf32, #tpu.memory_space<vmem>>, %arg6: memref<16x96xbf16, #tpu.memory_space<vmem>>) attributes {dimension_semantics = [#tpu.dimension_semantics<parallel>], iteration_bounds = array<i64: 1>, scalar_prefetch = 0 : i64, scratch_operands = 0 : i64, tpu.core_type = #tpu.core_type<tc>, window_params = [{transform_indices = @transform_0, window_bounds = array<i64: 16, 32>}, {pipeline_mode = #tpu.pipeline_mode<synchronous>, transform_indices = @transform_1, window_bounds = array<i64: 1, 32>}, {pipeline_mode = #tpu.pipeline_mode<synchronous>, transform_indices = @transform_2, window_bounds = array<i64: 1, 32>}, {pipeline_mode = #tpu.pipeline_mode<synchronous>, transform_indices = @transform_3, window_bounds = array<i64: 32, 96>}, {pipeline_mode = #tpu.pipeline_mode<synchronous>, transform_indices = @transform_4, window_bounds = array<i64: 1, 96>}, {transform_indices = @transform_5, window_bounds = array<i64: 16, 96>}]} {
    %c0 = arith.constant 0 : index
    %c0_0 = arith.constant 0 : index
    %0 = vector.load %arg1[%c0, %c0_0] : memref<16x32xf32, #tpu.memory_space<vmem>>, vector<16x32xf32>
    %c0_1 = arith.constant 0 : index
    %c0_2 = arith.constant 0 : index
    %1 = vector.load %arg2[%c0_1, %c0_2] : memref<1x32xf32, #tpu.memory_space<vmem>>, vector<1x32xf32>
    %c0_3 = arith.constant 0 : index
    %c0_4 = arith.constant 0 : index
    %2 = vector.load %arg3[%c0_3, %c0_4] : memref<1x32xf32, #tpu.memory_space<vmem>>, vector<1x32xf32>
    %cst = arith.constant dense<0.000000e+00> : vector<16xf32>
    %3 = vector.multi_reduction <add>, %0, %cst [1] : vector<16x32xf32> to vector<16xf32>
    %4 = vector.shape_cast %3 : vector<16xf32> to vector<16x1xf32>
    %cst_5 = arith.constant 3.200000e+01 : f32
    %5 = vector.broadcast %cst_5 : f32 to vector<16x1xf32>
    %6 = arith.divf %4, %5 : vector<16x1xf32>
    %7 = vector.broadcast %6 : vector<16x1xf32> to vector<16x32xf32>
    %8 = arith.subf %0, %7 : vector<16x32xf32>
    %9 = arith.mulf %8, %8 : vector<16x32xf32>
    %cst_6 = arith.constant dense<0.000000e+00> : vector<16xf32>
    %10 = vector.multi_reduction <add>, %9, %cst_6 [1] : vector<16x32xf32> to vector<16xf32>
    %11 = vector.shape_cast %10 : vector<16xf32> to vector<16x1xf32>
    %cst_7 = arith.constant 3.100000e+01 : f32
    %12 = vector.broadcast %cst_7 : f32 to vector<16x1xf32>
    %13 = arith.divf %11, %12 : vector<16x1xf32>
    %14 = math.sqrt %13 : vector<16x1xf32>
    %15 = vector.broadcast %6 : vector<16x1xf32> to vector<16x32xf32>
    %16 = arith.subf %0, %15 : vector<16x32xf32>
    %17 = vector.broadcast %1 : vector<1x32xf32> to vector<16x32xf32>
    %18 = arith.mulf %17, %16 : vector<16x32xf32>
    %cst_8 = arith.constant 9.99999997E-7 : f32
    %19 = vector.broadcast %cst_8 : f32 to vector<16x1xf32>
    %20 = arith.addf %14, %19 : vector<16x1xf32>
    %21 = vector.broadcast %20 : vector<16x1xf32> to vector<16x32xf32>
    %22 = arith.divf %18, %21 : vector<16x32xf32>
    %23 = vector.broadcast %2 : vector<1x32xf32> to vector<16x32xf32>
    %24 = arith.addf %22, %23 : vector<16x32xf32>
    %25 = arith.truncf %24 : vector<16x32xf32> to vector<16x32xbf16>
    %c0_9 = arith.constant 0 : index
    %c0_10 = arith.constant 0 : index
    %26 = vector.load %arg4[%c0_9, %c0_10] : memref<32x96xbf16, #tpu.memory_space<vmem>>, vector<32x96xbf16>
    %cst_11 = arith.constant dense<0.000000e+00> : vector<16x96xf32>
    %27 = tpu.matmul %25, %26, %cst_11 {dimension_numbers = #tpu.dot_dimension_numbers<[1], [0], [0], [1], [0, 0, 1, 1], [], []>} : vector<16x32xbf16>, vector<32x96xbf16>, vector<16x96xf32> -> vector<16x96xf32>
    %c0_12 = arith.constant 0 : index
    %c0_13 = arith.constant 0 : index
    %28 = vector.load %arg5[%c0_12, %c0_13] : memref<1x96xf32, #tpu.memory_space<vmem>>, vector<1x96xf32>
    %29 = vector.broadcast %28 : vector<1x96xf32> to vector<16x96xf32>
    %30 = arith.addf %27, %29 : vector<16x96xf32>
    %31 = arith.truncf %30 : vector<16x96xf32> to vector<16x96xbf16>
    %c0_14 = arith.constant 0 : index
    %c0_15 = arith.constant 0 : index
    %32 = vector.load %arg6[%c0_14, %c0_15] : memref<16x96xbf16, #tpu.memory_space<vmem>>, vector<16x96xbf16>
    tpu.vector_store %arg6[%c0_14, %c0_15], %31 {strides = array<i32>} : memref<16x96xbf16, #tpu.memory_space<vmem>>, vector<16x96xbf16>,
    return
  }
  func.func @transform_0(%arg0: i32) -> (i32, i32) {
    %c0_i32 = arith.constant 0 : i32
    %c0_i32_0 = arith.constant 0 : i32
    return %arg0, %c0_i32 : i32, i32
  }
  func.func @transform_1(%arg0: i32) -> (i32, i32) {
    %c0_i32 = arith.constant 0 : i32
    %c0_i32_0 = arith.constant 0 : i32
    %c0_i32_1 = arith.constant 0 : i32
    return %c0_i32, %c0_i32_0 : i32, i32
  }
  func.func @transform_2(%arg0: i32) -> (i32, i32) {
    %c0_i32 = arith.constant 0 : i32
    %c0_i32_0 = arith.constant 0 : i32
    %c0_i32_1 = arith.constant 0 : i32
    return %c0_i32, %c0_i32_0 : i32, i32
  }
  func.func @transform_3(%arg0: i32) -> (i32, i32) {
    %c0_i32 = arith.constant 0 : i32
    %c0_i32_0 = arith.constant 0 : i32
    %c0_i32_1 = arith.constant 0 : i32
    return %c0_i32, %c0_i32_0 : i32, i32
  }
  func.func @transform_4(%arg0: i32) -> (i32, i32) {
    %c0_i32 = arith.constant 0 : i32
    %c0_i32_0 = arith.constant 0 : i32
    %c0_i32_1 = arith.constant 0 : i32
    return %c0_i32, %c0_i32_0 : i32, i32
  }
  func.func @transform_5(%arg0: i32) -> (i32, i32) {
    %c0_i32 = arith.constant 0 : i32
    %c0_i32_0 = arith.constant 0 : i32
    return %arg0, %c0_i32 : i32, i32
  }
}

module attributes {stable_mosaic.version = 11 : i64} {
  func.func @_ln_ffn_residual_kernel(%arg0: i32, %arg1: memref<16x32xbf16, #tpu.memory_space<vmem>>, %arg2: memref<1x32xf32, #tpu.memory_space<vmem>>, %arg3: memref<1x32xf32, #tpu.memory_space<vmem>>, %arg4: memref<32x64xbf16, #tpu.memory_space<vmem>>, %arg5: memref<1x64xf32, #tpu.memory_space<vmem>>, %arg6: memref<64x32xbf16, #tpu.memory_space<vmem>>, %arg7: memref<1x32xf32, #tpu.memory_space<vmem>>, %arg8: memref<16x32xf32, #tpu.memory_space<vmem>>) attributes {dimension_semantics = [#tpu.dimension_semantics<parallel>], iteration_bounds = array<i64: 1>, scalar_prefetch = 0 : i64, scratch_operands = 0 : i64, tpu.core_type = #tpu.core_type<tc>, window_params = [{transform_indices = @transform_0, window_bounds = array<i64: 16, 32>}, {pipeline_mode = #tpu.pipeline_mode<synchronous>, transform_indices = @transform_1, window_bounds = array<i64: 1, 32>}, {pipeline_mode = #tpu.pipeline_mode<synchronous>, transform_indices = @transform_2, window_bounds = array<i64: 1, 32>}, {pipeline_mode = #tpu.pipeline_mode<synchronous>, transform_indices = @transform_3, window_bounds = array<i64: 32, 64>}, {pipeline_mode = #tpu.pipeline_mode<synchronous>, transform_indices = @transform_4, window_bounds = array<i64: 1, 64>}, {pipeline_mode = #tpu.pipeline_mode<synchronous>, transform_indices = @transform_5, window_bounds = array<i64: 64, 32>}, {pipeline_mode = #tpu.pipeline_mode<synchronous>, transform_indices = @transform_6, window_bounds = array<i64: 1, 32>}, {transform_indices = @transform_7, window_bounds = array<i64: 16, 32>}]} {
    %c0 = arith.constant 0 : index
    %c0_0 = arith.constant 0 : index
    %0 = vector.load %arg1[%c0, %c0_0] : memref<16x32xbf16, #tpu.memory_space<vmem>>, vector<16x32xbf16>
    %1 = arith.extf %0 : vector<16x32xbf16> to vector<16x32xf32>
    %c0_1 = arith.constant 0 : index
    %c0_2 = arith.constant 0 : index
    %2 = vector.load %arg2[%c0_1, %c0_2] : memref<1x32xf32, #tpu.memory_space<vmem>>, vector<1x32xf32>
    %c0_3 = arith.constant 0 : index
    %c0_4 = arith.constant 0 : index
    %3 = vector.load %arg3[%c0_3, %c0_4] : memref<1x32xf32, #tpu.memory_space<vmem>>, vector<1x32xf32>
    %cst = arith.constant dense<0.000000e+00> : vector<16xf32>
    %4 = vector.multi_reduction <add>, %1, %cst [1] : vector<16x32xf32> to vector<16xf32>
    %5 = vector.shape_cast %4 : vector<16xf32> to vector<16x1xf32>
    %cst_5 = arith.constant 3.200000e+01 : f32
    %6 = vector.broadcast %cst_5 : f32 to vector<16x1xf32>
    %7 = arith.divf %5, %6 : vector<16x1xf32>
    %8 = vector.broadcast %7 : vector<16x1xf32> to vector<16x32xf32>
    %9 = arith.subf %1, %8 : vector<16x32xf32>
    %10 = arith.mulf %9, %9 : vector<16x32xf32>
    %cst_6 = arith.constant dense<0.000000e+00> : vector<16xf32>
    %11 = vector.multi_reduction <add>, %10, %cst_6 [1] : vector<16x32xf32> to vector<16xf32>
    %12 = vector.shape_cast %11 : vector<16xf32> to vector<16x1xf32>
    %cst_7 = arith.constant 3.100000e+01 : f32
    %13 = vector.broadcast %cst_7 : f32 to vector<16x1xf32>
    %14 = arith.divf %12, %13 : vector<16x1xf32>
    %15 = math.sqrt %14 : vector<16x1xf32>
    %16 = vector.broadcast %7 : vector<16x1xf32> to vector<16x32xf32>
    %17 = arith.subf %1, %16 : vector<16x32xf32>
    %18 = vector.broadcast %2 : vector<1x32xf32> to vector<16x32xf32>
    %19 = arith.mulf %18, %17 : vector<16x32xf32>
    %cst_8 = arith.constant 9.99999997E-7 : f32
    %20 = vector.broadcast %cst_8 : f32 to vector<16x1xf32>
    %21 = arith.addf %15, %20 : vector<16x1xf32>
    %22 = vector.broadcast %21 : vector<16x1xf32> to vector<16x32xf32>
    %23 = arith.divf %19, %22 : vector<16x32xf32>
    %24 = vector.broadcast %3 : vector<1x32xf32> to vector<16x32xf32>
    %25 = arith.addf %23, %24 : vector<16x32xf32>
    %26 = arith.truncf %25 : vector<16x32xf32> to vector<16x32xbf16>
    %c0_9 = arith.constant 0 : index
    %c0_10 = arith.constant 0 : index
    %27 = vector.load %arg4[%c0_9, %c0_10] : memref<32x64xbf16, #tpu.memory_space<vmem>>, vector<32x64xbf16>
    %cst_11 = arith.constant dense<0.000000e+00> : vector<16x64xf32>
    %28 = tpu.matmul %26, %27, %cst_11 {dimension_numbers = #tpu.dot_dimension_numbers<[1], [0], [0], [1], [0, 0, 1, 1], [], []>} : vector<16x32xbf16>, vector<32x64xbf16>, vector<16x64xf32> -> vector<16x64xf32>
    %c0_12 = arith.constant 0 : index
    %c0_13 = arith.constant 0 : index
    %29 = vector.load %arg5[%c0_12, %c0_13] : memref<1x64xf32, #tpu.memory_space<vmem>>, vector<1x64xf32>
    %30 = vector.broadcast %29 : vector<1x64xf32> to vector<16x64xf32>
    %31 = arith.addf %28, %30 : vector<16x64xf32>
    %cst_14 = arith.constant 0.000000e+00 : f32
    %32 = vector.broadcast %cst_14 : f32 to vector<16x64xf32>
    %33 = arith.maximumf %31, %32 : vector<16x64xf32>
    %34 = arith.truncf %33 : vector<16x64xf32> to vector<16x64xbf16>
    %c0_15 = arith.constant 0 : index
    %c0_16 = arith.constant 0 : index
    %35 = vector.load %arg6[%c0_15, %c0_16] : memref<64x32xbf16, #tpu.memory_space<vmem>>, vector<64x32xbf16>
    %cst_17 = arith.constant dense<0.000000e+00> : vector<16x32xf32>
    %36 = tpu.matmul %34, %35, %cst_17 {dimension_numbers = #tpu.dot_dimension_numbers<[1], [0], [0], [1], [0, 0, 1, 1], [], []>} : vector<16x64xbf16>, vector<64x32xbf16>, vector<16x32xf32> -> vector<16x32xf32>
    %37 = arith.addf %1, %36 : vector<16x32xf32>
    %c0_18 = arith.constant 0 : index
    %c0_19 = arith.constant 0 : index
    %38 = vector.load %arg7[%c0_18, %c0_19] : memref<1x32xf32, #tpu.memory_space<vmem>>, vector<1x32xf32>
    %39 = vector.broadcast %38 : vector<1x32xf32> to vector<16x32xf32>
    %40 = arith.addf %37, %39 : vector<16x32xf32>
    %c0_20 = arith.constant 0 : index
    %c0_21 = arith.constant 0 : index
    %41 = vector.load %arg8[%c0_20, %c0_21] : memref<16x32xf32, #tpu.memory_space<vmem>>, vector<16x32xf32>
    tpu.vector_store %arg8[%c0_20, %c0_21], %40 {strides = array<i32>} : memref<16x32xf32, #tpu.memory_space<vmem>>, vector<16x32xf32>,
    return
  }
  func.func @transform_0(%arg0: i32) -> (i32, i32) {
    %c0_i32 = arith.constant 0 : i32
    %c0_i32_0 = arith.constant 0 : i32
    return %arg0, %c0_i32 : i32, i32
  }
  func.func @transform_1(%arg0: i32) -> (i32, i32) {
    %c0_i32 = arith.constant 0 : i32
    %c0_i32_0 = arith.constant 0 : i32
    %c0_i32_1 = arith.constant 0 : i32
    return %c0_i32, %c0_i32_0 : i32, i32
  }
  func.func @transform_2(%arg0: i32) -> (i32, i32) {
    %c0_i32 = arith.constant 0 : i32
    %c0_i32_0 = arith.constant 0 : i32
    %c0_i32_1 = arith.constant 0 : i32
    return %c0_i32, %c0_i32_0 : i32, i32
  }
  func.func @transform_3(%arg0: i32) -> (i32, i32) {
    %c0_i32 = arith.constant 0 : i32
    %c0_i32_0 = arith.constant 0 : i32
    %c0_i32_1 = arith.constant 0 : i32
    return %c0_i32, %c0_i32_0 : i32, i32
  }
  func.func @transform_4(%arg0: i32) -> (i32, i32) {
    %c0_i32 = arith.constant 0 : i32
    %c0_i32_0 = arith.constant 0 : i32
    %c0_i32_1 = arith.constant 0 : i32
    return %c0_i32, %c0_i32_0 : i32, i32
  }
  func.func @transform_5(%arg0: i32) -> (i32, i32) {
    %c0_i32 = arith.constant 0 : i32
    %c0_i32_0 = arith.constant 0 : i32
    %c0_i32_1 = arith.constant 0 : i32
    return %c0_i32, %c0_i32_0 : i32, i32
  }
  func.func @transform_6(%arg0: i32) -> (i32, i32) {
    %c0_i32 = arith.constant 0 : i32
    %c0_i32_0 = arith.constant 0 : i32
    %c0_i32_1 = arith.constant 0 : i32
    return %c0_i32, %c0_i32_0 : i32, i32
  }
  func.func @transform_7(%arg0: i32) -> (i32, i32) {
    %c0_i32 = arith.constant 0 : i32
    %c0_i32_0 = arith.constant 0 : i32
    return %arg0, %c0_i32 : i32, i32
  }
}

</mosaic_0001>

<bundles_post_ra>
// kernel: encoder_layer.5
= control target key start
LH: loop header
LB: loop body
LE: loop exit
PB: predicated region body
PF: predicated region fallthrough
CT: control target
= control target key end

     0   :  { %12 = vsyncpa [#allocation3], 0  ;;  %s795_s0 = inlined_call_operand.hbm [shape: bf16[16,32], index: 0, kind: input, shape index: {}]   ;;  %s796_s1 = inlined_call_operand.hbm [shape: f32[1,32], index: 1, kind: input, shape index: {}]   ;;  %s797_s2 = inlined_call_operand.hbm [shape: f32[1,32], index: 2, kind: input, shape index: {}]   ;;  %s798_s3 = inlined_call_operand.hbm [shape: bf16[32,64], index: 3, kind: input, shape index: {}]   ;;  %s799_s4 = inlined_call_operand.hbm [shape: f32[1,64], index: 4, kind: input, shape index: {}]   ;;  %s800_s5 = inlined_call_operand.hbm [shape: bf16[64,32], index: 5, kind: input, shape index: {}]   ;;  %s801_s6 = inlined_call_operand.hbm [shape: f32[1,32], index: 6, kind: input, shape index: {}]   ;;  %s802_s7 = inlined_call_operand.hbm [shape: f32[16,32], index: 7, kind: output, shape index: {}]  }
   0x1   :  { %13 = vsyncpa [#allocation6], 0 }
   0x2   :  { %14 = vsyncpa [#allocation9], 0 }
   0x3   :  { %15 = vsyncpa [#allocation12], 0 }
   0x4   :  { %16 = vsyncpa [#allocation4], 0  ;;  %s619_s24 = smov [#allocation5]   ;;  %s433_s28 = scalar_lea.hbm %s796_s1, 16 }
   0x5   :  { %s35_s25 = sshll.u32 %s619_s24, 4  ;;  %p434_p0 = scmp.ne.s32.totalorder %s796_s1, %s433_s28  ;;  %s36_s25 = int_to_ptr.vmem [resolvable:$true] %s35_s25 }
   0x6   :  { %p437_p1 = scmp.lt.u32.totalorder %s433_s28, %s796_s1 }
   0x8   :  { %p439_p2 = pnand %p437_p1, %p434_p0 }
   0xa   :  { %442 = shalt.err (!%p439_p2)
}
   0xb   :  { %s443_s10 = scalar_lea.vmem %s36_s25, 16  ;;  %s447_s11 = scalar_lea.vmem %s36_s25, 32 }
   0xc   :  { %p444_p3 = scmp.ne.s32.totalorder %s36_s25, %s443_s10  ;;  %p448_p4 = scmp.lt.s32.totalorder %s36_s25, %s36_s25 }
   0xd   :  { %p449_p5 = scmp.lt.s32.totalorder %s447_s11, %s443_s10 }
   0xf   :  { %p450_p6 = por %p449_p5, %p448_p4 }
  0x11   :  { %p451_p7 = pnand %p450_p6, %p444_p3 }
  0x13   :  { %454 = shalt.err (!%p451_p7)
}
  0x14   :  { %38 = dma.hbm_to_vmem [thread:$0]  %s796_s1, 16, %s36_s25, [#allocation6]  }
  0x15   :  { %s620_s14 = smov [#allocation8]   ;;  %s621_s16 = smov [#allocation11]  }
  0x16   :  { %s54_s15 = sshll.u32 %s620_s14, 4  ;;  %s76_s17 = sshll.u32 %s621_s16, 4  ;;  %s55_s15 = int_to_ptr.vmem [resolvable:$true] %s54_s15  ;;  %s77_s17 = int_to_ptr.vmem [resolvable:$true] %s76_s17 }
  0x17   :  { %s455_s20 = scalar_lea.hbm %s798_s3, 256 }
  0x18   :  { %p456_p8 = scmp.ne.s32.totalorder %s798_s3, %s455_s20  ;;  %p459_p9 = scmp.lt.u32.totalorder %s455_s20, %s798_s3 }
  0x1a   :  { %p461_p10 = pnand %p459_p9, %p456_p8 }
  0x1c   :  { %464 = shalt.err (!%p461_p10)
}
  0x1d   :  { %s465_s1 = scalar_lea.vmem %s55_s15, 256  ;;  %p470_p12 = scmp.lt.s32.totalorder %s55_s15, %s55_s15 }
  0x1e   :  { %p466_p11 = scmp.ne.s32.totalorder %s55_s15, %s465_s1  ;;  %p471_p13 = scmp.lt.s32.totalorder %s465_s1, %s465_s1 }
  0x20   :  { %p472_p0 = por %p471_p13, %p470_p12 }
  0x22   :  { %p473_p1 = pnand %p472_p0, %p466_p11 }
  0x24   :  { %476 = shalt.err (!%p473_p1)
}
  0x25   :  { %s622_s25 = smov 64   ;;  %s623_s26 = smov 4  }
  0x26   :  { %60 = dma.hbm_to_vmem [thread:$0]  %s798_s3, 256, %s55_s15, [#allocation9], %s622_s25, %s622_s25, %s623_s26  }
  0x27   :  { %s477_s8 = scalar_lea.hbm %s800_s5, 512 }
  0x28   :  { %p478_p2 = scmp.ne.s32.totalorder %s800_s5, %s477_s8  ;;  %p481_p3 = scmp.lt.u32.totalorder %s477_s8, %s800_s5 }
  0x2a   :  { %p483_p4 = pnand %p481_p3, %p478_p2 }
  0x2c   :  { %486 = shalt.err (!%p483_p4)
}
  0x2d   :  { %s487_s13 = scalar_lea.vmem %s77_s17, 512  ;;  %p492_p6 = scmp.lt.s32.totalorder %s77_s17, %s77_s17 }
  0x2e   :  { %p488_p5 = scmp.ne.s32.totalorder %s77_s17, %s487_s13  ;;  %p493_p7 = scmp.lt.s32.totalorder %s487_s13, %s487_s13 }
  0x30   :  { %p494_p8 = por %p493_p7, %p492_p6 }
  0x32   :  { %p495_p9 = pnand %p494_p8, %p488_p5 }
  0x34   :  { %498 = shalt.err (!%p495_p9)
}
  0x35   :  { %82 = dma.hbm_to_vmem [thread:$0]  %s800_s5, 512, %s77_s17, [#allocation12], %s622_s25, %s622_s25, %s623_s26  }
  0x36   :  { %s624_s15 = smov [#allocation2]   ;;  %s625_s18 = smov [#allocation7]  }
  0x37   :  { %s22_s16 = sshll.u32 %s624_s15, 4  ;;  %s45_s19 = sshll.u32 %s625_s18, 4  ;;  %s23_s16 = int_to_ptr.vmem [resolvable:$true] %s22_s16  ;;  %s46_s19 = int_to_ptr.vmem [resolvable:$true] %s45_s19 }
  0x38   :  { %s499_s22 = scalar_lea.hbm %s795_s0, 128 }
  0x39   :  { %p500_p10 = scmp.ne.s32.totalorder %s795_s0, %s499_s22  ;;  %p503_p11 = scmp.lt.u32.totalorder %s499_s22, %s795_s0 }
  0x3b   :  { %p505_p12 = pnand %p503_p11, %p500_p10 }
  0x3d   :  { %508 = shalt.err (!%p505_p12)
}
  0x3e   :  { %s509_s5 = scalar_lea.vmem %s23_s16, 128  ;;  %p514_p0 = scmp.lt.s32.totalorder %s23_s16, %s23_s16 }
  0x3f   :  { %p510_p13 = scmp.ne.s32.totalorder %s23_s16, %s509_s5  ;;  %p515_p1 = scmp.lt.s32.totalorder %s509_s5, %s509_s5 }
  0x41   :  { %p516_p2 = por %p515_p1, %p514_p0 }
  0x43   :  { %p517_p3 = pnand %p516_p2, %p510_p13 }
  0x45   :  { %520 = shalt.err (!%p517_p3)
}
  0x46   :  { %28 = dma.hbm_to_vmem [thread:$0]  %s795_s0, 128, %s23_s16, [#allocation3], %s622_s25, %s622_s25, %s623_s26  }
  0x47   :  { %s521_s8 = scalar_lea.hbm %s797_s2, 16 }
  0x48   :  { %p522_p4 = scmp.ne.s32.totalorder %s797_s2, %s521_s8  ;;  %p525_p5 = scmp.lt.u32.totalorder %s521_s8, %s797_s2 }
  0x4a   :  { %p527_p6 = pnand %p525_p5, %p522_p4 }
  0x4c   :  { %530 = shalt.err (!%p527_p6)
}
  0x4d   :  { %s531_s13 = scalar_lea.vmem %s46_s19, 16  ;;  %s535_s3 = scalar_lea.vmem %s46_s19, 32 }
  0x4e   :  { %p532_p7 = scmp.ne.s32.totalorder %s46_s19, %s531_s13  ;;  %p536_p8 = scmp.lt.s32.totalorder %s46_s19, %s46_s19 }
  0x4f   :  { %p537_p9 = scmp.lt.s32.totalorder %s535_s3, %s531_s13 }
  0x51   :  { %p538_p10 = por %p537_p9, %p536_p8 }
  0x53   :  { %p539_p11 = pnand %p538_p10, %p532_p7 }
  0x55   :  { %542 = shalt.err (!%p539_p11)
}
  0x56   :  { %48 = dma.hbm_to_vmem [thread:$0]  %s797_s2, 16, %s46_s19, [#allocation6]  }
  0x57   :  { %s626_s26 = smov [#allocation10]   ;;  %s627_s15 = smov [#allocation13]  }
  0x58   :  { %s67_s14 = sshll.u32 %s626_s26, 4  ;;  %s89_s16 = sshll.u32 %s627_s15, 4  ;;  %s68_s14 = int_to_ptr.vmem [resolvable:$true] %s67_s14  ;;  %s90_s16 = int_to_ptr.vmem [resolvable:$true] %s89_s16 }
  0x59   :  { %s543_s21 = scalar_lea.hbm %s799_s4, 16 }
  0x5a   :  { %p544_p12 = scmp.ne.s32.totalorder %s799_s4, %s543_s21  ;;  %p547_p13 = scmp.lt.u32.totalorder %s543_s21, %s799_s4 }
  0x5c   :  { %p549_p0 = pnand %p547_p13, %p544_p12 }
  0x5e   :  { %552 = shalt.err (!%p549_p0)
}
  0x5f   :  { %s553_s2 = scalar_lea.vmem %s68_s14, 16  ;;  %s557_s19 = scalar_lea.vmem %s68_s14, 32 }
  0x60   :  { %p554_p1 = scmp.ne.s32.totalorder %s68_s14, %s553_s2  ;;  %p558_p2 = scmp.lt.s32.totalorder %s68_s14, %s68_s14 }
  0x61   :  { %p559_p3 = scmp.lt.s32.totalorder %s557_s19, %s553_s2 }
  0x63   :  { %p560_p4 = por %p559_p3, %p558_p2 }
  0x65   :  { %p561_p5 = pnand %p560_p4, %p554_p1 }
  0x67   :  { %564 = shalt.err (!%p561_p5)
}
  0x68   :  { %70 = dma.hbm_to_vmem [thread:$0]  %s799_s4, 16, %s68_s14, [#allocation9]  }
  0x69   :  { %s565_s29 = scalar_lea.hbm %s801_s6, 16 }
  0x6a   :  { %p566_p6 = scmp.ne.s32.totalorder %s801_s6, %s565_s29  ;;  %p569_p7 = scmp.lt.u32.totalorder %s565_s29, %s801_s6 }
  0x6c   :  { %p571_p8 = pnand %p569_p7, %p566_p6 }
  0x6e   :  { %574 = shalt.err (!%p571_p8)
}
  0x6f   :  { %s575_s11 = scalar_lea.vmem %s90_s16, 16  ;;  %s579_s12 = scalar_lea.vmem %s90_s16, 32 }
  0x70   :  { %p576_p9 = scmp.ne.s32.totalorder %s90_s16, %s575_s11  ;;  %p580_p10 = scmp.lt.s32.totalorder %s90_s16, %s90_s16 }
  0x71   :  { %p581_p11 = scmp.lt.s32.totalorder %s579_s12, %s575_s11 }
  0x73   :  { %p582_p12 = por %p581_p11, %p580_p10 }
  0x75   :  { %p583_p13 = pnand %p582_p12, %p576_p9 }
  0x77   :  { %586 = shalt.err (!%p583_p13)
}
  0x78   :  { %92 = dma.hbm_to_vmem [thread:$0]  %s801_s6, 16, %s90_s16, [#allocation12]  }
  0x79   :  { %609 = dma.done.wait [#allocation3], 128  }
  0x7a   :  { %610 = vsyncadd [#allocation3], 4294967168 }
  0x7b   :  { %611 = dma.done.wait [#allocation6], 32  }
  0x7c   :  { %612 = vsyncadd [#allocation6], 4294967264 }
  0x7d   :  { %613 = dma.done.wait [#allocation9], 272  }
  0x7e   :  { %614 = vsyncadd [#allocation9], 4294967024 }
  0x7f   :  { %615 = dma.done.wait [#allocation12], 528  }
  0x80   :  { %616 = vsyncadd [#allocation12], 4294966768  ;;  %v374_v0 = vld [vmem:[#allocation2] sm:$0xff]   ;;  %vm121_vm0 = vcmask 261120   ;;  %v419_v15 = vld [vmem:[#allocation8] sm:$0xff]   ;;  %v628_v16 = vmov 0.0  }
  0x81   :  { %v766_v1 = vunpack.c.l.bf16 %v374_v0  ;;  %v768_v2 = vunpack.c.h.bf16 %v374_v0  ;;  %385 = vmatprep.subr.bf16.mxu0 %v628_v16  ;;  %vm629_vm1 = vmmov 0   ;;  %v420_v17 = vld [vmem:[#allocation8 + $0x8] sm:$0xff]   ;;  %393 = vmatprep.subr.bf16.mxu1 %v628_v16  ;;  %v421_v18 = vld [vmem:[#allocation11] sm:$0xff]   ;;  %v422_v19 = vld [vmem:[#allocation11 + $0x8] sm:$0xff]   ;;  %vm283_vm6 = vcmask 523264   ;;  %s630_s6 = smov [#allocation14]  }
  0x82   :  { %389 = vmatprep.mubr.msk.bf16.mxu0 %vm629_vm1, %v628_v16  ;;  %386 = vmatpush3.bf16.msra.mxu0 %v419_v15  ;;  %v361_v36 = vld [vmem:[#allocation5] ss:$0 sm:$0xff]  ;;  %v362_v42 = vld [vmem:[#allocation7] ss:$0 sm:$0xff]  ;;  %v423_v47 = vld [vmem:[#allocation11 + $0x10] sm:$0xff]   ;;  %s346_s3 = sshll.u32 %s630_s6, 4  ;;  %s347_s3 = int_to_ptr.vmem [resolvable:$true] %s346_s3 }
  0x83   :  { %v122_v3 = vsel %vm121_vm0, %v766_v1, 0.0  ;;  %v125_v4 = vsel %vm121_vm0, %v768_v2, 0.0  ;;  %387 = vmatprep.subr.bf16.mxu0 %v628_v16  ;;  %401 = vmatprep.mubr.msk.bf16.mxu1 %vm629_vm1, %v628_v16  ;;  %v424_v48 = vld [vmem:[#allocation11 + $0x18] sm:$0xff]   ;;  %v372_v60 = vld [vmem:[#allocation13] ss:$0 sm:$0xff]  ;;  %s587_s0 = scalar_lea.vmem %s347_s3, 256  ;;  %p592_p1 = scmp.lt.s32.totalorder %s347_s3, %s347_s3 }
  0x84   :  { %123 = vadd.xlane.f32.xlu0 %v122_v3  ;;  %394 = vmatpush3.bf16.msra.mxu1 %v421_v18  ;;  %v363_v49 = vld [vmem:[#allocation10] ss:$0 sm:$0xff]  ;;  %p588_p0 = scmp.ne.s32.totalorder %s347_s3, %s587_s0  ;;  %p593_p2 = scmp.lt.s32.totalorder %s587_s0, %s587_s0 }
  0x85   :  { %395 = vmatprep.subr.bf16.mxu1 %v628_v16 }
  0x86   :  { %388 = vmatpush3.bf16.msra.mxu0 %v420_v17  ;;  %p594_p3 = por %p593_p2, %p592_p1 }
  0x88   :  { %126 = vadd.xlane.f32.xlu0 %v125_v4  ;;  %396 = vmatpush3.bf16.msra.mxu1 %v422_v19  ;;  %p595_p4 = pnand %p594_p3, %p588_p0 }
  0x89   :  { %397 = vmatprep.subr.bf16.mxu1 %v628_v16 }
  0x8c   :  { %398 = vmatpush3.bf16.msra.mxu1 %v423_v47 }
  0x8d   :  { %399 = vmatprep.subr.bf16.mxu1 %v628_v16 }
  0x90   :  { %400 = vmatpush3.bf16.msra.mxu1 %v424_v48 }
 0x111   :  { %v124_v5 = vpop.xlane.xlu0 %123 }
 0x112   :  { %v129_v6 = vmul.f32 0.03125, %v124_v5 }
 0x114   :  { %v131_v7 = vsub.f32 %v766_v1, %v129_v6 }
 0x115   :  { %v127_v8 = vpop.xlane.xlu0 %126 }
 0x116   :  { %v130_v9 = vmul.f32 0.03125, %v127_v8  ;;  %v133_v10 = vmul.f32 %v131_v7, %v131_v7  ;;  %v164_v38 = vmul.f32 %v361_v36, %v131_v7 }
 0x118   :  { %v132_v11 = vsub.f32 %v768_v2, %v130_v9  ;;  %v135_v12 = vsel %vm121_vm0, %v133_v10, 0.0 }
 0x119   :  { %136 = vadd.xlane.f32.xlu1 %v135_v12 }
 0x11a   :  { %v134_v13 = vmul.f32 %v132_v11, %v132_v11  ;;  %v165_v39 = vmul.f32 %v361_v36, %v132_v11 }
 0x11c   :  { %v138_v14 = vsel %vm121_vm0, %v134_v13, 0.0 }
 0x11d   :  { %139 = vadd.xlane.f32.xlu1 %v138_v14 }
 0x1a6   :  { %v137_v20 = vpop.xlane.xlu1 %136 }
 0x1a7   :  { %v142_v21 = vmul.f32 0.032258064, %v137_v20 }
 0x1a9   :  { %425 = vrsqrt.f32 %v142_v21  ;;  %vm146_vm2 = vcmp.eq.f32.partialorder %v142_v21, inf  ;;  %v149_v26 = vand.u32 2147483648, %v142_v21  ;;  %vm148_vm3 = vcmp.eq.f32.partialorder %v142_v21, 0.0 }
 0x1aa   :  { %v140_v22 = vpop.xlane.xlu1 %139 }
 0x1ab   :  { %v143_v23 = vmul.f32 0.032258064, %v140_v22 }
 0x1ad   :  { %427 = vrsqrt.f32 %v143_v23  ;;  %vm153_vm4 = vcmp.eq.f32.partialorder %v143_v23, inf  ;;  %v156_v32 = vand.u32 2147483648, %v143_v23  ;;  %vm155_vm5 = vcmp.eq.f32.partialorder %v143_v23, 0.0 }
 0x1b3   :  { %v426_v24 = vpop.eup %425 }
 0x1b4   :  { %v145_v25 = vmul.f32 %v426_v24, %v142_v21 }
 0x1b6   :  { %v147_v27 = vsel %vm146_vm2, %v142_v21, %v145_v25 }
 0x1b7   :  { %v428_v28 = vpop.eup %427  ;;  %v150_v29 = vsel %vm148_vm3, %v149_v26, %v147_v27 }
 0x1b8   :  { %v166_v30 = vadd.f32 1e-06, %v150_v29  ;;  %v152_v31 = vmul.f32 %v428_v28, %v143_v23 }
 0x1ba   :  { %429 = vrcp.f32 %v166_v30  ;;  %v154_v33 = vsel %vm153_vm4, %v143_v23, %v152_v31 }
 0x1bb   :  { %v157_v34 = vsel %vm155_vm5, %v156_v32, %v154_v33 }
 0x1bc   :  { %v167_v35 = vadd.f32 1e-06, %v157_v34 }
 0x1be   :  { %431 = vrcp.f32 %v167_v35 }
 0x1c4   :  { %v430_v37 = vpop.eup %429 }
 0x1c5   :  { %v169_v40 = vmul.f32 %v430_v37, %v164_v38 }
 0x1c7   :  { %v178_v44 = vadd.f32 %v362_v42, %v169_v40 }
 0x1c8   :  { %v432_v41 = vpop.eup %431 }
 0x1c9   :  { %v171_v43 = vmul.f32 %v432_v41, %v165_v39 }
 0x1cb   :  { %v179_v45 = vadd.f32 %v362_v42, %v171_v43 }
 0x1cd   :  { %v180_v46 = vpack.c.bf16 %v179_v45, %v178_v44 }
 0x1cf   :  { %390 = vmatmul.mubr.msk.bf16.vlgmr.msra.gmra.mrb[0].mxu0 %vm121_vm0, %v180_v46 }
 0x2a2   :  { %v241_v50 = vpop.f32.mrb[0].mxu0 }
 0x2a3   :  { %v242_v51 = vadd.f32 %v363_v49, %v241_v50  ;;  %v391_v52 = vpop.f32.mrb[1].mxu0 }
 0x2a4   :  { %v244_v53 = vpop.f32.mrb[2].mxu0 }
 0x2a5   :  { %v245_v54 = vadd.f32 %v363_v49, %v244_v53  ;;  %v392_v55 = vpop.f32.mrb[3].mxu0  ;;  %v248_v56 = vmax.f32 %v242_v51, 0.0 }
 0x2a7   :  { %v249_v57 = vmax.f32 %v245_v54, 0.0 }
 0x2a9   :  { %v250_v58 = vpack.c.bf16 %v249_v57, %v248_v56 }
 0x2ab   :  { %402 = vmatmul.mubr.msk.bf16.vlgmr.msra.gmra.mrb[0].mxu1 %vm283_vm6, %v250_v58 }
 0x37e   :  { %v321_v59 = vpop.f32.mrb[0].mxu1 }
 0x37f   :  { %v328_v61 = vadd.f32 %v766_v1, %v321_v59  ;;  %v403_v62 = vpop.f32.mrb[1].mxu1 }
 0x380   :  { %v324_v63 = vpop.f32.mrb[2].mxu1 }
 0x381   :  { %v337_v0 = vadd.f32 %v372_v60, %v328_v61  ;;  %v329_v3 = vadd.f32 %v768_v2, %v324_v63  ;;  %v404_v4 = vpop.f32.mrb[3].mxu1 }
 0x383   :  { %339 = vst.msk [vmem:[#allocation14] sm:$0xff] %vm121_vm0, %v337_v0  ;;  %v338_v5 = vadd.f32 %v372_v60, %v329_v3 }
 0x385   :  { %340 = vst.msk [vmem:[#allocation14 + $0x8] sm:$0xff] %vm121_vm0, %v338_v5 }
 0x386   :  { %598 = shalt.err (!%p595_p4)
}
 0x387   :  { %s599_s14 = scalar_lea.hbm %s802_s7, 256 }
 0x388   :  { %p600_p5 = scmp.ne.s32.totalorder %s802_s7, %s599_s14  ;;  %p603_p6 = scmp.lt.u32.totalorder %s599_s14, %s802_s7 }
 0x38a   :  { %p605_p7 = pnand %p603_p6, %p600_p5 }
 0x38c   :  { %608 = shalt.err (!%p605_p7)
}
 0x38d   :  { %s631_s21 = smov 128   ;;  %s632_s22 = smov 8  }
 0x38e   :  { %352 = dma.vmem_to_hbm [thread:$0]  %s347_s3, 256, %s802_s7, [#allocation4], %s631_s21, %s631_s21, %s632_s22  }
 0x38f   :  { %617 = dma.done.wait [#allocation4], 256  }
 0x390   :  { %618 = vsyncadd [#allocation4], 4294967040 }
 0x391   :  { %356 = vsyncpa [#allocation3], 1 }
 0x392   :  { %357 = vsyncpa [#allocation6], 1 }
 0x393   :  { %358 = vsyncpa [#allocation9], 1 }
 0x394   :  { %359 = vsyncpa [#allocation12], 1 }
 0x395   :  { %360 = vsyncpa [#allocation4], 1 }

// kernel: encoder_layer.3
= control target key start
LH: loop header
LB: loop body
LE: loop exit
PB: predicated region body
PF: predicated region fallthrough
CT: control target
= control target key end

     0   :  { %10 = vsyncpa [#allocation3], 0  ;;  %s560_s0 = inlined_call_operand.hbm [shape: f32[16,32], index: 0, kind: input, shape index: {}]   ;;  %s561_s1 = inlined_call_operand.hbm [shape: f32[1,32], index: 1, kind: input, shape index: {}]   ;;  %s562_s2 = inlined_call_operand.hbm [shape: f32[1,32], index: 2, kind: input, shape index: {}]   ;;  %s563_s3 = inlined_call_operand.hbm [shape: bf16[32,96], index: 3, kind: input, shape index: {}]   ;;  %s564_s4 = inlined_call_operand.hbm [shape: f32[1,96], index: 4, kind: input, shape index: {}]   ;;  %s565_s5 = inlined_call_operand.hbm [shape: bf16[16,96], index: 5, kind: output, shape index: {}]  }
   0x1   :  { %11 = vsyncpa [#allocation6], 0 }
   0x2   :  { %12 = vsyncpa [#allocation9], 0 }
   0x3   :  { %13 = vsyncpa [#allocation4], 0  ;;  %s428_s18 = smov [#allocation5]   ;;  %s429_s20 = smov [#allocation8]  }
   0x4   :  { %s32_s19 = sshll.u32 %s428_s18, 4  ;;  %s51_s21 = sshll.u32 %s429_s20, 4  ;;  %s33_s19 = int_to_ptr.vmem [resolvable:$true] %s32_s19  ;;  %s470_s21 = int_to_ptr.vmem [resolvable:$true] %s51_s21 }
   0x5   :  { %s288_s24 = scalar_lea.hbm %s561_s1, 16 }
   0x6   :  { %p289_p0 = scmp.ne.s32.totalorder %s561_s1, %s288_s24  ;;  %p292_p1 = scmp.lt.u32.totalorder %s288_s24, %s561_s1 }
   0x8   :  { %p294_p2 = pnand %p292_p1, %p289_p0 }
   0xa   :  { %297 = shalt.err (!%p294_p2)
}
   0xb   :  { %s298_s29 = scalar_lea.vmem %s33_s19, 16  ;;  %s302_s30 = scalar_lea.vmem %s33_s19, 32 }
   0xc   :  { %p299_p3 = scmp.ne.s32.totalorder %s33_s19, %s298_s29  ;;  %p303_p4 = scmp.lt.s32.totalorder %s33_s19, %s33_s19 }
   0xd   :  { %p304_p5 = scmp.lt.s32.totalorder %s302_s30, %s298_s29 }
   0xf   :  { %p305_p6 = por %p304_p5, %p303_p4 }
  0x11   :  { %p306_p7 = pnand %p305_p6, %p299_p3 }
  0x13   :  { %309 = shalt.err (!%p306_p7)
}
  0x14   :  { %35 = dma.hbm_to_vmem [thread:$0]  %s561_s1, 16, %s33_s19, [#allocation6]  }
  0x15   :  { %s310_s10 = scalar_lea.hbm %s563_s3, 256 }
  0x16   :  { %p311_p8 = scmp.ne.s32.totalorder %s563_s3, %s310_s10  ;;  %p314_p9 = scmp.lt.u32.totalorder %s310_s10, %s563_s3 }
  0x18   :  { %p316_p10 = pnand %p314_p9, %p311_p8 }
  0x1a   :  { %319 = shalt.err (!%p316_p10)
}
  0x1b   :  { %s320_s15 = scalar_lea.vmem %s470_s21, 256  ;;  %p325_p12 = scmp.lt.s32.totalorder %s470_s21, %s470_s21 }
  0x1c   :  { %p321_p11 = scmp.ne.s32.totalorder %s470_s21, %s320_s15  ;;  %p326_p13 = scmp.lt.s32.totalorder %s320_s15, %s320_s15 }
  0x1e   :  { %p327_p0 = por %p326_p13, %p325_p12 }
  0x20   :  { %p328_p1 = pnand %p327_p0, %p321_p11 }
  0x22   :  { %331 = shalt.err (!%p328_p1)
}
  0x23   :  { %s430_s1 = smov 64   ;;  %s431_s16 = smov 4  }
  0x24   :  { %57 = dma.hbm_to_vmem [thread:$0]  %s563_s3, 256, %s470_s21, [#allocation9], %s430_s1, %s430_s1, %s431_s16  }
  0x25   :  { %s432_s19 = smov [#allocation2]   ;;  %s332_s24 = scalar_lea.hbm %s560_s0, 256 }
  0x26   :  { %s19_s20 = sshll.u32 %s432_s19, 4  ;;  %p333_p2 = scmp.ne.s32.totalorder %s560_s0, %s332_s24  ;;  %s20_s20 = int_to_ptr.vmem [resolvable:$true] %s19_s20 }
  0x27   :  { %p336_p3 = scmp.lt.u32.totalorder %s332_s24, %s560_s0 }
  0x29   :  { %p338_p4 = pnand %p336_p3, %p333_p2 }
  0x2b   :  { %341 = shalt.err (!%p338_p4)
}
  0x2c   :  { %s342_s29 = scalar_lea.vmem %s20_s20, 256  ;;  %p347_p6 = scmp.lt.s32.totalorder %s20_s20, %s20_s20 }
  0x2d   :  { %p343_p5 = scmp.ne.s32.totalorder %s20_s20, %s342_s29  ;;  %p348_p7 = scmp.lt.s32.totalorder %s342_s29, %s342_s29 }
  0x2f   :  { %p349_p8 = por %p348_p7, %p347_p6 }
  0x31   :  { %p350_p9 = pnand %p349_p8, %p343_p5 }
  0x33   :  { %353 = shalt.err (!%p350_p9)
}
  0x34   :  { %s433_s3 = smov 128   ;;  %s434_s21 = smov 8  }
  0x35   :  { %25 = dma.hbm_to_vmem [thread:$0]  %s560_s0, 256, %s20_s20, [#allocation3], %s433_s3, %s433_s3, %s434_s21  }
  0x36   :  { %s435_s7 = smov [#allocation7]   ;;  %s436_s9 = smov [#allocation10]  }
  0x37   :  { %s42_s8 = sshll.u32 %s435_s7, 4  ;;  %s64_s10 = sshll.u32 %s436_s9, 4  ;;  %s43_s8 = int_to_ptr.vmem [resolvable:$true] %s42_s8  ;;  %s65_s10 = int_to_ptr.vmem [resolvable:$true] %s64_s10 }
  0x38   :  { %s354_s13 = scalar_lea.hbm %s562_s2, 16 }
  0x39   :  { %p355_p10 = scmp.ne.s32.totalorder %s562_s2, %s354_s13  ;;  %p358_p11 = scmp.lt.u32.totalorder %s354_s13, %s562_s2 }
  0x3b   :  { %p360_p12 = pnand %p358_p11, %p355_p10 }
  0x3d   :  { %363 = shalt.err (!%p360_p12)
}
  0x3e   :  { %s364_s0 = scalar_lea.vmem %s43_s8, 16  ;;  %s368_s19 = scalar_lea.vmem %s43_s8, 32 }
  0x3f   :  { %p365_p13 = scmp.ne.s32.totalorder %s43_s8, %s364_s0  ;;  %p369_p0 = scmp.lt.s32.totalorder %s43_s8, %s43_s8 }
  0x40   :  { %p370_p1 = scmp.lt.s32.totalorder %s368_s19, %s364_s0 }
  0x42   :  { %p371_p2 = por %p370_p1, %p369_p0 }
  0x44   :  { %p372_p3 = pnand %p371_p2, %p365_p13 }
  0x46   :  { %375 = shalt.err (!%p372_p3)
}
  0x47   :  { %45 = dma.hbm_to_vmem [thread:$0]  %s562_s2, 16, %s43_s8, [#allocation6]  }
  0x48   :  { %s376_s25 = scalar_lea.hbm %s564_s4, 16 }
  0x49   :  { %p377_p4 = scmp.ne.s32.totalorder %s564_s4, %s376_s25  ;;  %p380_p5 = scmp.lt.u32.totalorder %s376_s25, %s564_s4 }
  0x4b   :  { %p382_p6 = pnand %p380_p5, %p377_p4 }
  0x4d   :  { %385 = shalt.err (!%p382_p6)
}
  0x4e   :  { %s386_s3 = scalar_lea.vmem %s65_s10, 16  ;;  %s390_s21 = scalar_lea.vmem %s65_s10, 32 }
  0x4f   :  { %p387_p7 = scmp.ne.s32.totalorder %s65_s10, %s386_s3  ;;  %p391_p8 = scmp.lt.s32.totalorder %s65_s10, %s65_s10 }
  0x50   :  { %p392_p9 = scmp.lt.s32.totalorder %s390_s21, %s386_s3 }
  0x52   :  { %p393_p10 = por %p392_p9, %p391_p8 }
  0x54   :  { %p394_p11 = pnand %p393_p10, %p387_p7 }
  0x56   :  { %397 = shalt.err (!%p394_p11)
}
  0x57   :  { %67 = dma.hbm_to_vmem [thread:$0]  %s564_s4, 16, %s65_s10, [#allocation9]  }
  0x58   :  { %420 = dma.done.wait [#allocation3], 256  }
  0x59   :  { %421 = vsyncadd [#allocation3], 4294967040 }
  0x5a   :  { %422 = dma.done.wait [#allocation6], 32  }
  0x5b   :  { %423 = vsyncadd [#allocation6], 4294967264 }
  0x5c   :  { %424 = dma.done.wait [#allocation9], 272  }
  0x5d   :  { %425 = vsyncadd [#allocation9], 4294967024  ;;  %vm88_vm0 = vcmask 261120   ;;  %v84_v0 = vld [vmem:[#allocation2] sm:$0xff]  ;;  %v85_v1 = vld [vmem:[#allocation2 + $0x8] sm:$0xff]  ;;  %v437_v15 = vmov 0.0  }
  0x5e   :  { %v89_v2 = vsel %vm88_vm0, %v84_v0, 0.0  ;;  %v92_v3 = vsel %vm88_vm0, %v85_v1, 0.0  ;;  %v278_v14 = vld [vmem:[#allocation8] sm:$0xff]   ;;  %258 = vmatprep.subr.bf16.mxu0 %v437_v15  ;;  %vm438_vm1 = vmmov 0   ;;  %v279_v16 = vld [vmem:[#allocation8 + $0x8] sm:$0xff]   ;;  %vm223_vm6 = vcmask 781312  }
  0x5f   :  { %90 = vadd.xlane.f32.xlu0 %v89_v2  ;;  %262 = vmatprep.mubr.msk.bf16.mxu0 %vm438_vm1, %v437_v15  ;;  %v245_v33 = vld [vmem:[#allocation5] ss:$0 sm:$0xff]  ;;  %v246_v39 = vld [vmem:[#allocation7] ss:$0 sm:$0xff]  ;;  %v247_v44 = vld [vmem:[#allocation10] ss:$0 sm:$0xff] }
  0x60   :  { %259 = vmatpush3.bf16.msra.mxu0 %v278_v14  ;;  %s439_s4 = smov [#allocation11]  }
  0x61   :  { %260 = vmatprep.subr.bf16.mxu0 %v437_v15  ;;  %s231_s6 = sshll.u32 %s439_s4, 4  ;;  %s232_s6 = int_to_ptr.vmem [resolvable:$true] %s231_s6 }
  0x62   :  { %s398_s7 = scalar_lea.vmem %s232_s6, 128  ;;  %p403_p13 = scmp.lt.s32.totalorder %s232_s6, %s232_s6 }
  0x63   :  { %93 = vadd.xlane.f32.xlu0 %v92_v3  ;;  %p399_p12 = scmp.ne.s32.totalorder %s232_s6, %s398_s7  ;;  %p404_p0 = scmp.lt.s32.totalorder %s398_s7, %s398_s7 }
  0x64   :  { %261 = vmatpush3.bf16.msra.mxu0 %v279_v16 }
  0x65   :  { %p405_p1 = por %p404_p0, %p403_p13 }
  0x67   :  { %p406_p2 = pnand %p405_p1, %p399_p12 }
  0xec   :  { %v91_v4 = vpop.xlane.xlu0 %90 }
  0xed   :  { %v96_v5 = vmul.f32 0.03125, %v91_v4 }
  0xef   :  { %v98_v6 = vsub.f32 %v84_v0, %v96_v5 }
  0xf0   :  { %v94_v7 = vpop.xlane.xlu0 %93 }
  0xf1   :  { %v97_v8 = vmul.f32 0.03125, %v94_v7  ;;  %v100_v9 = vmul.f32 %v98_v6, %v98_v6  ;;  %v131_v35 = vmul.f32 %v245_v33, %v98_v6 }
  0xf3   :  { %v99_v10 = vsub.f32 %v85_v1, %v97_v8  ;;  %v102_v11 = vsel %vm88_vm0, %v100_v9, 0.0 }
  0xf4   :  { %103 = vadd.xlane.f32.xlu1 %v102_v11 }
  0xf5   :  { %v101_v12 = vmul.f32 %v99_v10, %v99_v10  ;;  %v132_v36 = vmul.f32 %v245_v33, %v99_v10 }
  0xf7   :  { %v105_v13 = vsel %vm88_vm0, %v101_v12, 0.0 }
  0xf8   :  { %106 = vadd.xlane.f32.xlu1 %v105_v13 }
 0x181   :  { %v104_v17 = vpop.xlane.xlu1 %103 }
 0x182   :  { %v109_v18 = vmul.f32 0.032258064, %v104_v17 }
 0x184   :  { %280 = vrsqrt.f32 %v109_v18  ;;  %vm113_vm2 = vcmp.eq.f32.partialorder %v109_v18, inf  ;;  %v116_v23 = vand.u32 2147483648, %v109_v18  ;;  %vm115_vm3 = vcmp.eq.f32.partialorder %v109_v18, 0.0 }
 0x185   :  { %v107_v19 = vpop.xlane.xlu1 %106 }
 0x186   :  { %v110_v20 = vmul.f32 0.032258064, %v107_v19 }
 0x188   :  { %282 = vrsqrt.f32 %v110_v20  ;;  %vm120_vm4 = vcmp.eq.f32.partialorder %v110_v20, inf  ;;  %v123_v29 = vand.u32 2147483648, %v110_v20  ;;  %vm122_vm5 = vcmp.eq.f32.partialorder %v110_v20, 0.0 }
 0x18e   :  { %v281_v21 = vpop.eup %280 }
 0x18f   :  { %v112_v22 = vmul.f32 %v281_v21, %v109_v18 }
 0x191   :  { %v114_v24 = vsel %vm113_vm2, %v109_v18, %v112_v22 }
 0x192   :  { %v283_v25 = vpop.eup %282  ;;  %v117_v26 = vsel %vm115_vm3, %v116_v23, %v114_v24 }
 0x193   :  { %v133_v27 = vadd.f32 1e-06, %v117_v26  ;;  %v119_v28 = vmul.f32 %v283_v25, %v110_v20 }
 0x195   :  { %284 = vrcp.f32 %v133_v27  ;;  %v121_v30 = vsel %vm120_vm4, %v110_v20, %v119_v28 }
 0x196   :  { %v124_v31 = vsel %vm122_vm5, %v123_v29, %v121_v30 }
 0x197   :  { %v134_v32 = vadd.f32 1e-06, %v124_v31 }
 0x199   :  { %286 = vrcp.f32 %v134_v32 }
 0x19f   :  { %v285_v34 = vpop.eup %284 }
 0x1a0   :  { %v136_v37 = vmul.f32 %v285_v34, %v131_v35 }
 0x1a2   :  { %v145_v41 = vadd.f32 %v246_v39, %v136_v37 }
 0x1a3   :  { %v287_v38 = vpop.eup %286 }
 0x1a4   :  { %v138_v40 = vmul.f32 %v287_v38, %v132_v36 }
 0x1a6   :  { %v146_v42 = vadd.f32 %v246_v39, %v138_v40 }
 0x1a8   :  { %v147_v43 = vpack.c.bf16 %v146_v42, %v145_v41 }
 0x1aa   :  { %263 = vmatmul.mubr.msk.bf16.vlgmr.msra.gmra.mrb[0].mxu0 %vm88_vm0, %v147_v43 }
 0x27d   :  { %v208_v45 = vpop.f32.mrb[0].mxu0 }
 0x27e   :  { %v209_v46 = vadd.f32 %v247_v44, %v208_v45  ;;  %v264_v47 = vpop.f32.mrb[1].mxu0 }
 0x27f   :  { %v211_v48 = vpop.f32.mrb[2].mxu0 }
 0x280   :  { %v253_v49 = vpack.c.bf16 %v209_v46, %v209_v46  ;;  %v212_v50 = vadd.f32 %v247_v44, %v211_v48  ;;  %v265_v51 = vpop.f32.mrb[3].mxu0 }
 0x282   :  { %v254_v52 = vpack.c.bf16 %v212_v50, %v212_v50  ;;  %224 = vst.msk [vmem:[#allocation11] sm:$0xf] %vm223_vm6, %v253_v49 }
 0x284   :  { %225 = vst.msk [vmem:[#allocation11 + $0x4] sm:$0xf] %vm223_vm6, %v254_v52 }
 0x285   :  { %409 = shalt.err (!%p406_p2)
}
 0x286   :  { %s410_s10 = scalar_lea.hbm %s565_s5, 128 }
 0x287   :  { %p411_p3 = scmp.ne.s32.totalorder %s565_s5, %s410_s10  ;;  %p414_p4 = scmp.lt.u32.totalorder %s410_s10, %s565_s5 }
 0x289   :  { %p416_p5 = pnand %p414_p4, %p411_p3 }
 0x28b   :  { %419 = shalt.err (!%p416_p5)
}
 0x28c   :  { %237 = dma.vmem_to_hbm [thread:$0]  %s232_s6, 128, %s565_s5, [#allocation4], %s430_s1, %s430_s1, %s431_s16  }
 0x28d   :  { %426 = dma.done.wait [#allocation4], 128  }
 0x28e   :  { %427 = vsyncadd [#allocation4], 4294967168 }
 0x28f   :  { %241 = vsyncpa [#allocation3], 1 }
 0x290   :  { %242 = vsyncpa [#allocation6], 1 }
 0x291   :  { %243 = vsyncpa [#allocation9], 1 }
 0x292   :  { %244 = vsyncpa [#allocation4], 1 }

// kernel: encoder_layer.4
= control target key start
LH: loop header
LB: loop body
LE: loop exit
PB: predicated region body
PF: predicated region fallthrough
CT: control target
= control target key end

     0   :  { %s2007_s0 = inlined_call_operand.hbm [shape: f32[2,8,32], index: 0, kind: input, shape index: {}]   ;;  %s2008_s1 = inlined_call_operand.hbm [shape: bf16[2,8,96], index: 1, kind: input, shape index: {}]   ;;  %s2009_s2 = inlined_call_operand.hbm [shape: f32[2,1,8], index: 2, kind: input, shape index: {}]   ;;  %s2010_s3 = inlined_call_operand.hbm [shape: bf16[32,32], index: 3, kind: input, shape index: {}]   ;;  %s2011_s4 = inlined_call_operand.hbm [shape: f32[1,32], index: 4, kind: input, shape index: {}]   ;;  %s2012_s5 = inlined_call_operand.hbm [shape: bf16[2,8,32], index: 5, kind: output, shape index: {}]  }
   0x1   :  { %2025 = sst [smem:[#allocation19_spill]] %s2008_s1 }
   0x2   :  { %2026 = sst [smem:[#allocation20_spill]] %s2010_s3 }
   0x3   :  { %10 = vsyncpa [#allocation4], 0 }
   0x4   :  { %12 = vsyncpa [#allocation4 + $0x1], 0 }
   0x5   :  { %13 = vsyncpa [#allocation7], 0 }
   0x6   :  { %15 = vsyncpa [#allocation7 + $0x1], 0 }
   0x7   :  { %16 = vsyncpa [#allocation10], 0 }
   0x8   :  { %17 = vsyncpa [#allocation5], 0 }
   0x9   :  { %19 = vsyncpa [#allocation5 + $0x1], 0  ;;  %s1610_s18 = smov 0   ;;  %s1612_s19 = smov 0  }
   0xa   :  { %s1614_s20 = smov 0   ;;  %s1616_s21 = smov 0  }
   0xb   :  { %s1618_s22 = smov 0   ;;  %s1620_s23 = smov 0  }
   0xc LB: > { %s1641_s24 = sadd.s32 4294967295, %s1553_s23   ;;  %s1078_s25 = sadd.s32 4294967294, %s1553_s23   ;;  %s1553_s23 = sphi %s1620_s23, %s25_s23   ;;  %s1549_s22 = sphi %s1618_s22, %s2058_s22   ;;  %s1545_s21 = sphi %s1616_s21, %s2057_s21   ;;  %s1541_s20 = sphi %s1614_s20, %s2056_s20   ;;  %s1537_s19 = sphi %s1612_s19, %s2055_s19   ;;  %s1533_s18 = sphi %s1610_s18, %s2054_s18  }
   0xd   : > { %p57_p0 = scmp.ne.s32.totalorder %s1537_s19, %s1533_s18  ;;  %p2013_p1 = scmp.eq.s32.totalorder %s1641_s24, 0 }
   0xe   : > { %p188_p3 = scmp.eq.s32.totalorder %s1078_s25, 1  ;;  %p1079_p5 = scmp.ge.s32.totalorder %s1553_s23, 1 }
   0xf   : > { %p1650_p4 = por %p2013_p1, %p57_p0  ;;  %p195_p7 = scmp.lt.s32.totalorder %s1553_s23, 3 }
  0x10   : > { %p1655_p6 = por %p188_p3, %p57_p0  ;;  %s1555_s29 = smov [#allocation9]  }
  0x11   : > { %s2027_s26 = scalar_select %p1650_p4, 1, 0 }
  0x12   : > { %s2028_s27 = scalar_select %p1655_p6, 1, 0 }
  0x13   : > { %p1660_p8 = pnand %p1079_p5, %p195_p7  ;;  %s210_s30 = sshll.u32 %s1555_s29, 4  ;;  %s211_s30 = int_to_ptr.vmem [resolvable:$true] %s210_s30 }
  0x14   : > { %s37_s7 = sadd.s32 1, %s1549_s22  ;;  %s2031_s3 = sld [smem:[#allocation20_spill]] }
  0x15   : > { %s2029_s28 = scalar_select %p1660_p8, 1, 0 }
  0x16   : > { %p1202_p9 = pneg %p1660_p8 }
  0x18   : > { %p1669_p11 = pnand %p1202_p9, %p2013_p1 }
  0x1a   : > { %s2030_s6 = scalar_select %p1669_p11, 1, 0 }
  0x1b   : > { %s1317_s10 = scalar_lea.hbm %s2031_s3, 256  ;;  %p2017_p13 = pneg %p1669_p11 }
  0x1c   : > { %p1318_p12 = scmp.ne.s32.totalorder %s2031_s3, %s1317_s10  ;;  %p1324_p5 = scmp.lt.u32.totalorder %s1317_s10, %s2031_s3 }
  0x1e   : > { %p1320_p0 = pnand %p2017_p13, %p1318_p12 }
  0x20   : > { %p1321_p3 = pneg %p1320_p0 }
  0x22   : > { %p1326_p7 = pnand %p1324_p5, %p1321_p3 }
  0x24   : > { %1329 = shalt.err (!%p1326_p7)
}
  0x25   : > { %s1330_s15 = scalar_lea.vmem %s211_s30, 256  ;;  %p1338_p2 = scmp.lt.s32.totalorder %s211_s30, %s211_s30 }
  0x26   : > { %p1331_p9 = scmp.ne.s32.totalorder %s211_s30, %s1330_s15  ;;  %p1339_p6 = scmp.lt.s32.totalorder %s1330_s15, %s1330_s15 }
  0x28   : > { %p1333_p10 = pnand %p1331_p9, %p2017_p13  ;;  %p1340_p4 = por %p1339_p6, %p1338_p2 }
  0x2a   : > { %p1334_p1 = pneg %p1333_p10 }
  0x2c   : > { %p1341_p8 = pnand %p1340_p4, %p1334_p1 }
  0x2e   : > { %1344 = shalt.err (!%p1341_p8)
}
  0x2f   : > { %s1556_s16 = smov 64   ;;  %s1557_s17 = smov 4  }
  0x30   : > { %1205 = dma.hbm_to_vmem [thread:$0]  (!%p1669_p11), %s2031_s3, 256, %s211_s30, [#allocation10], %s1556_s16, %s1556_s16, %s1557_s17  }
  0x31   : > { %p39_p1 = scmp.ge.s32.totalorder %s37_s7, 2  ;;  %s44_s8 = sadd.s32 1, %s1541_s20 }
  0x32   : > { %p51_p2 = scmp.ne.s32.totalorder %s1541_s20, %s1537_s19  ;;  %p52_p4 = scmp.eq.s32.totalorder %s1553_s23, 0 }
  0x33   : > { %s2060_s7 = smov (%p39_p1, %s37_s7), 0  ;;  %p2033_p8 = scmp.eq.s32.totalorder %s1641_s24, 1 }
  0x34   : > { %2032 = sst [smem:[#allocation17_spill]] %s2060_s7  ;;  %p53_p6 = por %p52_p4, %p51_p2 }
  0x35   : > { %p1704_p10 = por %p2033_p8, %p51_p2  ;;  %s41_s10 = ssub.s32 %s1549_s22, %s2060_s7 }
  0x36   : > { %p1225_p12 = scmp.lt.s32.totalorder %s1553_s23, 2  ;;  %p42_p0 = scmp.eq.s32.totalorder %s41_s10, 0 }
  0x37   : > { %s2034_s9 = scalar_select %p1704_p10, 1, 0 }
  0x38   : > { %s1712_s11 = sand.u32 1, %s1541_s20   ;;  %p1714_p3 = pnand %p1225_p12, %p53_p6 }
  0x39   : > { %s253_s12 = sand.u32 1, %s1553_s23   ;;  %s1085_s14 = sshll.u32 %s1712_s11, 2 }
  0x3a   : > { %s2035_s30 = scalar_select %p1714_p3, 1, 0 }
  0x3b   : > { %s1720_s13 = scalar_select %p42_p0, %s1541_s20, %s44_s8  }
  0x3c   : > { %s1086_s15 = sshll.u32 %s1549_s22, 6  ;;  %s2037_s1 = sld [smem:[#allocation19_spill]] }
  0x3d   : > { %2036 = sst [smem:[#allocation18_spill]] %s1720_s13  ;;  %s257_s29 = scalar_lea.vmem [#allocation6], %s1085_s14 }
  0x3e   : > { %s265_s10 = sshll.u32 %s257_s29, 4  ;;  %s1558_s3 = smov [#allocation11]   ;;  %s1729_s10 = int_to_ptr.vmem [resolvable:$true] %s265_s10 }
  0x3f   : > { %s1731_s7 = sshll.u32 %s1558_s3, 4  ;;  %s1733_s8 = scalar_lea.sflag [#allocation7], %s253_s12  ;;  %s225_s7 = int_to_ptr.vmem [resolvable:$true] %s1731_s7 }
  0x40   : > { %p1739_p7 = pneg %p1714_p3 }
  0x42   : > { %s1727_s25 = scalar_lea.hbm %s2037_s1, %s1086_s15  ;;  %s1350_s17 = scalar_lea.hbm %s2037_s1, 128 }
  0x43   : > { %s1345_s13 = scalar_lea.hbm %s1727_s25, 64  ;;  %p1351_p2 = scmp.lt.u32.totalorder %s1727_s25, %s2037_s1 }
  0x44   : > { %p1346_p5 = scmp.ne.s32.totalorder %s1727_s25, %s1345_s13  ;;  %p1352_p4 = scmp.lt.u32.totalorder %s1350_s17, %s1345_s13 }
  0x45   : > { %s2038_s16 = scalar_select %p1739_p7, 1, 0 }
  0x46   : > { %p1348_p9 = pnand %p1739_p7, %p1346_p5  ;;  %p1353_p6 = por %p1352_p4, %p1351_p2 }
  0x47   : > { %p1354_p8 = scmp.lt.u32.totalorder %s1345_s13, %s1727_s25 }
  0x48   : > { %p1349_p1 = pneg %p1348_p9 }
  0x49   : > { %p1355_p12 = por %p1354_p8, %p1353_p6 }
  0x4b   : > { %p1356_p0 = pnand %p1355_p12, %p1349_p1 }
  0x4d   : > { %1359 = shalt.err (!%p1356_p0)
}
  0x4e   : > { %s1360_s12 = scalar_lea.vmem %s1729_s10, 64  ;;  %s1559_s14 = smov [#allocation6]  }
  0x4f   : > { %p1361_p5 = scmp.ne.s32.totalorder %s1729_s10, %s1360_s12  ;;  %s1365_s15 = sshll.u32 %s1559_s14, 4  ;;  %s1366_s15 = int_to_ptr.vmem [resolvable:$false] %s1365_s15 }
  0x50   : > { %s1367_s29 = scalar_lea.vmem %s1366_s15, 128  ;;  %p1368_p10 = scmp.lt.s32.totalorder %s1729_s10, %s1366_s15 }
  0x51   : > { %p1363_p9 = pnand %p1361_p5, %p1739_p7  ;;  %p1369_p11 = scmp.lt.s32.totalorder %s1367_s29, %s1360_s12 }
  0x53   : > { %p1364_p13 = pneg %p1363_p9  ;;  %p1370_p2 = por %p1369_p11, %p1368_p10 }
  0x55   : > { %p1371_p4 = pnand %p1370_p2, %p1364_p13 }
  0x57   : > { %1374 = shalt.err (!%p1371_p4)
}
  0x58   : > { %1215 = dma.hbm_to_vmem [thread:$0]  (!%p1714_p3), %s1727_s25, 64, %s1729_s10, %s1733_s8  }
  0x59   : > { %s1375_s3 = scalar_lea.hbm %s2011_s4, 16  ;;  %p2039_p11 = scmp.ne.s32.totalorder %s2030_s6, 0 }
  0x5a   : > { %p1376_p1 = scmp.ne.s32.totalorder %s2011_s4, %s1375_s3  ;;  %p1382_p8 = scmp.lt.u32.totalorder %s1375_s3, %s2011_s4 }
  0x5b   : > { %p2040_p13 = pneg %p2039_p11 }
  0x5d   : > { %p1378_p10 = pnand %p1376_p1, %p2040_p13 }
  0x5f   : > { %p1379_p6 = pneg %p1378_p10 }
  0x61   : > { %p1384_p12 = pnand %p1382_p8, %p1379_p6 }
  0x63   : > { %1387 = shalt.err (!%p1384_p12)
}
  0x64   : > { %s1388_s25 = scalar_lea.vmem %s225_s7, 16  ;;  %p2041_p5 = pmov %p2040_p13 }
  0x65   : > { %p1389_p0 = scmp.ne.s32.totalorder %s225_s7, %s1388_s25  ;;  %s1395_s10 = scalar_lea.vmem %s225_s7, 32 }
  0x66   : > { %p1396_p4 = scmp.lt.s32.totalorder %s225_s7, %s225_s7  ;;  %p1397_p3 = scmp.lt.s32.totalorder %s1395_s10, %s1388_s25 }
  0x67   : > { %p1391_p9 = pnand %p1389_p0, %p2041_p5 }
  0x68   : > { %p1398_p7 = por %p1397_p3, %p1396_p4 }
  0x69   : > { %p1392_p2 = pneg %p1391_p9 }
  0x6b   : > { %p1399_p1 = pnand %p1398_p7, %p1392_p2 }
  0x6d   : > { %1402 = shalt.err (!%p1399_p1)
}
  0x6e   : > { %1208 = dma.hbm_to_vmem [thread:$0]  (!%p2039_p11), %s2011_s4, 16, %s225_s7, [#allocation10]  }
  0x6f   : > { %s1083_s13 = sshll.u32 %s1712_s11, 3  ;;  %s1084_s17 = sshll.u32 %s1549_s22, 7 }
  0x70   : > { %s1789_s12 = scalar_lea.hbm %s2007_s0, %s1084_s17  ;;  %s239_s6 = scalar_lea.vmem [#allocation3], %s1083_s13 }
  0x71   : > { %s246_s15 = sshll.u32 %s239_s6, 4  ;;  %s1087_s25 = sshll.u32 %s1549_s22, 4  ;;  %s1791_s15 = int_to_ptr.vmem [resolvable:$true] %s246_s15 }
  0x72   : > { %s236_s10 = scalar_lea.sflag [#allocation4], %s1712_s11  ;;  %s1403_s1 = scalar_lea.hbm %s1789_s12, 128 }
  0x73   : > { %p1404_p3 = scmp.ne.s32.totalorder %s1789_s12, %s1403_s1  ;;  %p2042_p7 = scmp.ne.s32.totalorder %s2038_s16, 0 }
  0x74   : > { %s1408_s17 = scalar_lea.hbm %s2007_s0, 256  ;;  %p1409_p10 = scmp.lt.u32.totalorder %s1789_s12, %s2007_s0 }
  0x75   : > { %p1406_p11 = pnand %p1404_p3, %p2042_p7  ;;  %p1410_p6 = scmp.lt.u32.totalorder %s1408_s17, %s1403_s1 }
  0x76   : > { %p1412_p12 = scmp.lt.u32.totalorder %s1403_s1, %s1789_s12 }
  0x77   : > { %p1407_p13 = pneg %p1406_p11  ;;  %p1411_p8 = por %p1410_p6, %p1409_p10 }
  0x79   : > { %p1413_p0 = por %p1412_p12, %p1411_p8 }
  0x7b   : > { %p1414_p5 = pnand %p1413_p0, %p1407_p13 }
  0x7d   : > { %1417 = shalt.err (!%p1414_p5)
}
  0x7e   : > { %s1418_s13 = scalar_lea.vmem %s1791_s15, 128  ;;  %s1560_s6 = smov [#allocation3]  }
  0x7f   : > { %p1419_p9 = scmp.ne.s32.totalorder %s1791_s15, %s1418_s13  ;;  %s1423_s7 = sshll.u32 %s1560_s6, 4  ;;  %s1424_s7 = int_to_ptr.vmem [resolvable:$false] %s1423_s7 }
  0x80   : > { %s1425_s29 = scalar_lea.vmem %s1424_s7, 256  ;;  %p1426_p1 = scmp.lt.s32.totalorder %s1791_s15, %s1424_s7 }
  0x81   : > { %p1421_p2 = pnand %p1419_p9, %p2042_p7  ;;  %p1427_p3 = scmp.lt.s32.totalorder %s1425_s29, %s1418_s13 }
  0x83   : > { %p1422_p4 = pneg %p1421_p2  ;;  %p1428_p11 = por %p1427_p3, %p1426_p1 }
  0x85   : > { %p1429_p10 = pnand %p1428_p11, %p1422_p4 }
  0x87   : > { %1432 = shalt.err (!%p1429_p10)
}
  0x88   : > { %p2043_p13 = scmp.ne.s32.totalorder %s2035_s30, 0  ;;  %s1821_s3 = scalar_lea.hbm %s2009_s2, %s1087_s25 }
  0x89   : > { %s275_s14 = scalar_lea.vmem [#allocation8], %s1712_s11  ;;  %s1433_s6 = scalar_lea.hbm %s1821_s3, 16 }
  0x8a   : > { %1212 = dma.hbm_to_vmem [thread:$0]  (!%p2043_p13), %s1789_s12, 128, %s1791_s15, %s236_s10  }
  0x8b   : > { %s282_s13 = sshll.u32 %s275_s14, 4  ;;  %p1434_p6 = scmp.ne.s32.totalorder %s1821_s3, %s1433_s6  ;;  %s283_s13 = int_to_ptr.vmem [resolvable:$true] %s282_s13 }
  0x8c   : > { %s1438_s15 = scalar_lea.hbm %s2009_s2, 32  ;;  %p1439_p0 = scmp.lt.u32.totalorder %s1821_s3, %s2009_s2 }
  0x8d   : > { %p1436_p8 = pnand %p1434_p6, %p2042_p7  ;;  %p1440_p5 = scmp.lt.u32.totalorder %s1438_s15, %s1433_s6 }
  0x8e   : > { %p1442_p2 = scmp.lt.u32.totalorder %s1433_s6, %s1821_s3 }
  0x8f   : > { %p1437_p12 = pneg %p1436_p8  ;;  %p1441_p9 = por %p1440_p5, %p1439_p0 }
  0x91   : > { %p1443_p4 = por %p1442_p2, %p1441_p9 }
  0x93   : > { %p1444_p1 = pnand %p1443_p4, %p1437_p12 }
  0x95   : > { %1447 = shalt.err (!%p1444_p1)
}
  0x96   : > { %s1448_s11 = scalar_lea.vmem %s283_s13, 16  ;;  %s1561_s25 = smov [#allocation8]  }
  0x97   : > { %p1449_p3 = scmp.ne.s32.totalorder %s283_s13, %s1448_s11  ;;  %s1453_s1 = sshll.u32 %s1561_s25, 4  ;;  %s1454_s1 = int_to_ptr.vmem [resolvable:$false] %s1453_s1 }
  0x98   : > { %s1455_s17 = scalar_lea.vmem %s1454_s1, 32  ;;  %p1456_p6 = scmp.lt.s32.totalorder %s283_s13, %s1454_s1 }
  0x99   : > { %p1451_p11 = pnand %p1449_p3, %p2042_p7  ;;  %p1457_p8 = scmp.lt.s32.totalorder %s1455_s17, %s1448_s11 }
  0x9b   : > { %p1452_p10 = pneg %p1451_p11  ;;  %p1458_p13 = por %p1457_p8, %p1456_p6 }
  0x9d   : > { %p1459_p0 = pnand %p1458_p13, %p1452_p10 }
  0x9f   : > { %1462 = shalt.err (!%p1459_p0)
}
  0xa0   : > { %p2044_p5 = scmp.ne.s32.totalorder %s2035_s30, 0  ;;  %p2045_p12 = scmp.ne.s32.totalorder %s2029_s28, 0 }
  0xa1   : > { %s1845_s16 = sand.u32 (!%p2045_p12), 1, %s1537_s19   ;;  %p2046_p7 = scmp.ne.s32.totalorder (!%p2045_p12), %s2027_s26, 0 }
  0xa2   : > { %1218 = dma.hbm_to_vmem [thread:$0]  (!%p2044_p5), %s1821_s3, 16, %s283_s13, %s1733_s8  }
  0xa3   : > { %291 = sbr.rel (%p2045_p12) target bundleno = 2002 (0x7d2), region = 40  ;;  %s1089_s14 = sshll.u32 (!%p2045_p12), %s1845_s16, 3 }
  0xa4   : > { %s294_s6 = scalar_lea.sflag (!%p2045_p12), [#allocation4], %s1845_s16  ;;  %s1849_s7 = scalar_lea.vmem (!%p2045_p12), [#allocation3], %s1089_s14 }
  0xaa   : > { %1516 = dma.done.wait (%p2046_p7), %s294_s6, 128  }
  0xab   : > { %1518 = vsyncadd (%p2046_p7), %s294_s6, 4294967168  ;;  %s302_s28 = sand.u32 1, %s1641_s24   ;;  %s1090_s30 = sshll.u32 %s1845_s16, 2 }
  0xac   : > { %s303_s8 = scalar_lea.sflag [#allocation7], %s302_s28  ;;  %s306_s3 = scalar_lea.vmem [#allocation6], %s1090_s30 }
  0xad   : > { %1520 = dma.done.wait (%p2046_p7), %s303_s8, 80  }
  0xae   : > { %1522 = vsyncadd (%p2046_p7), %s303_s8, 4294967216  ;;  %s314_s13 = scalar_lea.vmem [#allocation8], %s1845_s16  ;;  %p2047_p13 = scmp.eq.s32.totalorder %s1641_s24, 0 }
  0xb0   : > { %1524 = dma.done.wait (%p2047_p13), [#allocation10], 272   ;;  %p2048_p9 = pmov %p2047_p13 }
  0xb1   : > { %v1562_v0 = vmov 0.0   ;;  %vm1563_vm0 = vmmov 0   ;;  %v375_v1 = vld [vmem:[%s306_s3] sm:$0xf]  ;;  %s1564_s26 = smov 96   ;;  %vm383_vm1 = vcmask 64512   ;;  %v432_v5 = vlaneseq }
  0xb2   : > { %1526 = vsyncadd (%p2048_p9), [#allocation10], 4294967024  ;;  %1130 = vmatprep.subr.bf16.mxu0 %v1562_v0  ;;  %1132 = vmatprep.mubr.msk.bf16.mxu0 %vm1563_vm0, %v1562_v0  ;;  %v1874_v2 = vcombine.low %v375_v1, %v375_v1  ;;  %s1565_s24 = smov 64   ;;  %s1566_s12 = smov 88   ;;  %v376_v6 = vld [vmem:[%s314_s13] sm:$0x1] }
  0xb3   : > { %1136 = vmatprep.subr.bf16.mxu1 %v1562_v0  ;;  %1138 = vmatprep.mubr.msk.bf16.mxu1 %vm1563_vm0, %v1562_v0  ;;  %v433_v7 = vshrl.u32 %v432_v5, 7  ;;  %vm377_vm2 = vcmp.ne.f32.partialorder %v376_v6, 0.0  ;;  %v1567_v9 = vmov 0   ;;  %s1568_s15 = smov 72   ;;  %vm455_vm4 = vcmask 1043456   ;;  %s1569_s10 = smov 120  }
  0xb4   : > { %381 = vrot.lane.b32.xlu0 %v1874_v2, %s1564_s26  ;;  %450 = vrot.lane.b32.xlu1 %v1874_v2, %s1565_s24  ;;  %v431_v10 = vsel %vm377_vm2, 1, %v1567_v9  ;;  %s1570_s29 = smov 80   ;;  %s1571_s11 = smov 112   ;;  %vm373_vm5 = vcmask 261120   ;;  %vm848_vm6 = vcmask 130048   ;;  %vm850_vm7 = vcmask 195584  }
  0xb5   : > { %v434_v8 = vsub.s32 0, %v433_v7  ;;  %s1572_s25 = smov 104   ;;  %s1573_s1 = smov 56   ;;  %vm921_vm8 = vcmask 257024  }
  0xb6   : > { %s1574_s17 = smov 48   ;;  %s1575_s14 = smov 40  }
  0xb7   : > { %v1884_v11 = vrot.slane %v431_v10, %v434_v8  ;;  %s1576_s6 = smov 8   ;;  %s1577_s28 = smov 16  }
  0xb8   : > { %501 = vrot.lane.b32.xlu1 %v1874_v2, %s1566_s12  ;;  %s1578_s8 = smov 24   ;;  %s357_s3 = scalar_lea.vmem [#allocation12], %s1090_s30 }
  0xb9   : > { %vm436_vm3 = vcmp.eq.s32.totalorder %v1884_v11, 1  ;;  %s937_s13 = sshll.u32 %s357_s3, 4  ;;  %p2049_p4 = scmp.ne.s32.totalorder %s2034_s9, 0  ;;  %s1960_s13 = int_to_ptr.vmem [resolvable:$true] %s937_s13 }
 0x126   : > { %v382_v3 = vpop.permute.xlu0 %381  ;;  %v451_v19 = vpop.permute.xlu1 %450 }
 0x127   : > { %v388_v4 = vsel %vm383_vm1, %v382_v3, 0  ;;  %v457_v20 = vsel %vm455_vm4, %v451_v19, 0 }
 0x128   : > { %1131 = vmatpush3.bf16.xpose.msra.mxu0 %v388_v4  ;;  %1137 = vmatpush3.bf16.msra.mxu1 %v457_v20 }
 0x129   : > { %1148 = vmatprep.subr.bf16.mxu0 %v1562_v0  ;;  %1142 = vmatprep.subr.bf16.mxu1 %v1562_v0 }
 0x12a   : > { %v502_v26 = vpop.permute.xlu1 %501 }
 0x12b   : > { %v507_v32 = vsel %vm383_vm1, %v502_v26, 0 }
 0x12f   : > { %1133 = vmatmul.mubr.msk.bf16.vlgmr.msra.gmra.mrb[0].mxu0 %vm383_vm1, %v375_v1 }
 0x130   : > { %1150 = vmatprep.mubr.msk.bf16.mxu0 %vm1563_vm0, %v1562_v0 }
 0x202   : > { %v424_v12 = vpop.f32.mrb[0].mxu0 }
 0x203   : > { %v430_v13 = vmul.f32 0.35355338, %v424_v12  ;;  %v1134_v14 = vpop.f32.mrb[1].mxu0 }
 0x204   : > { %v427_v15 = vpop.f32.mrb[2].mxu0 }
 0x205   : > { %v1135_v16 = vpop.f32.mrb[3].mxu0  ;;  %v437_v17 = vsel %vm436_vm3, %v430_v13, -1e+09 }
 0x206   : > { %v438_v18 = vsel %vm383_vm1, %v437_v17, -inf }
 0x207   : > { %439 = vmax.xlane.f32.xlu0 %v438_v18 }
 0x21d   : > { %725 = vrot.lane.b32.xlu0 %v1874_v2, %s1568_s15  ;;  %s924_s15 = scalar_lea.sflag [#allocation5], %s1845_s16 }
 0x294   : > { %v440_v21 = vpop.xlane.xlu0 %439 }
 0x295   : > { %v441_v22 = vsub.f32 %v437_v17, %v440_v21 }
 0x297   : > { %v442_v23 = vmul.f32 1.442695, %v441_v22 }
 0x298   : > { %v726_v35 = vpop.permute.xlu0 %725 }
 0x299   : > { %1301 = vpow2.f32 %v442_v23  ;;  %v731_v37 = vsel %vm383_vm1, %v726_v35, 0 }
 0x2a3   : > { %v1302_v24 = vpop.eup %1301 }
 0x2a4   : > { %v444_v25 = vsel %vm383_vm1, %v1302_v24, 0.0 }
 0x2a5   : > { %445 = vadd.xlane.f32.xlu1 %v444_v25 }
 0x2b6   : > { %499 = vrot.lane.b32.xlu1 %v1874_v2, %s1569_s10  ;;  %s1463_s10 = scalar_lea.vmem %s1960_s13, 64 }
 0x2b7   : > { %p1464_p2 = scmp.ne.s32.totalorder %s1960_s13, %s1463_s10 }
 0x2b9   : > { %p1465_p1 = pnand %p1464_p2, %p2049_p4 }
 0x2ba   : > { %613 = vrot.lane.b32.xlu1 %v1874_v2, %s1570_s29 }
 0x2bb   : > { %p1466_p3 = pneg %p1465_p1 }
 0x2be   : > { %611 = vrot.lane.b32.xlu1 %v1874_v2, %s1571_s11 }
 0x2c2   : > { %723 = vrot.lane.b32.xlu1 %v1874_v2, %s1572_s25 }
 0x332   : > { %v446_v27 = vpop.xlane.xlu1 %445 }
 0x333   : > { %1303 = vrcp.f32 %v446_v27 }
 0x336   : > { %v500_v30 = vpop.permute.xlu1 %499 }
 0x33a   : > { %v614_v33 = vpop.permute.xlu1 %613 }
 0x33b   : > { %v619_v34 = vsel %vm383_vm1, %v614_v33, 0 }
 0x33d   : > { %v1304_v28 = vpop.eup %1303 }
 0x33e   : > { %v448_v29 = vmul.f32 %v1304_v28, %v1302_v24  ;;  %v612_v36 = vpop.permute.xlu1 %611 }
 0x340   : > { %v449_v31 = vpack.c.bf16 %v448_v29, %v448_v29 }
 0x342   : > { %1139 = vmatmul.mubr.msk.bf16.vlgmr.msra.gmra.mrb[0].mxu1 %vm383_vm1, %v449_v31  ;;  %v724_v38 = vpop.permute.xlu1 %723 }
 0x343   : > { %1143 = vmatpush3.bf16.xpose.msra.mxu1 %v507_v32  ;;  %1144 = vmatprep.mubr.msk.bf16.mxu1 %vm1563_vm0, %v1562_v0 }
 0x344   : > { %1154 = vmatprep.subr.bf16.mxu1 %v1562_v0 }
 0x34a   : > { %1145 = vmatmul.mubr.msk.bf16.vlgmr.msra.gmra.mrb[4].mxu1 %vm383_vm1, %v500_v30 }
 0x34b   : > { %1155 = vmatpush3.bf16.xpose.msra.mxu1 %v619_v34  ;;  %1156 = vmatprep.mubr.msk.bf16.mxu1 %vm1563_vm0, %v1562_v0 }
 0x34c   : > { %1166 = vmatprep.subr.bf16.mxu1 %v1562_v0 }
 0x352   : > { %1157 = vmatmul.mubr.msk.bf16.vlgmr.msra.gmra.mrb[8].mxu1 %vm383_vm1, %v612_v36 }
 0x353   : > { %1167 = vmatpush3.bf16.xpose.msra.mxu1 %v731_v37  ;;  %1168 = vmatprep.mubr.msk.bf16.mxu1 %vm1563_vm0, %v1562_v0 }
 0x354   : > { %1178 = vmatprep.subr.bf16.mxu1 %v1562_v0 }
 0x35a   : > { %1169 = vmatmul.mubr.msk.bf16.vlgmr.msra.gmra.mrb[12].mxu1 %vm383_vm1, %v724_v38  ;;  %v1299_v38 = vld [vmem:[#allocation9] sm:$0xff]  }
 0x35b   : > { %1182 = vmatprep.mubr.msk.bf16.mxu1 %vm1563_vm0, %v1562_v0  ;;  %1179 = vmatpush3.bf16.msra.mxu1 %v1299_v38 }
 0x35c   : > { %1180 = vmatprep.subr.bf16.mxu1 %v1562_v0 }
 0x415   : > { %v1916_v39 = vpop.f32.mrb[0].mxu1 }
 0x416   : > { %v1140_v40 = vpop.f32.mrb[1].mxu1 }
 0x417   : > { %v496_v41 = vpop.f32.mrb[2].mxu1  ;;  %v1300_v40 = vld [vmem:[#allocation9 + $0x8] sm:$0xff]  }
 0x418   : > { %v1141_v42 = vpop.f32.mrb[3].mxu1  ;;  %1181 = vmatpush3.bf16.msra.mxu1 %v1300_v40  ;;  %v364_v41 = vld [vmem:[%s1849_s7] sm:$0xff]  ;;  %s1108_s7 = sshll.u32 %s1545_s21, 6  ;;  %s1579_s21 = smov [#allocation12]  }
 0x419   : > { %v1094_v42 = vld [vmem:[#allocation11] ss:$0 sm:$0xff]  ;;  %s1958_s12 = scalar_lea.hbm %s2012_s5, %s1108_s7  ;;  %s1467_s30 = sshll.u32 %s1579_s21, 4  ;;  %s1468_s30 = int_to_ptr.vmem [resolvable:$false] %s1467_s30 }
 0x41a   : > { %s1469_s29 = scalar_lea.vmem %s1468_s30, 128  ;;  %p1470_p11 = scmp.lt.s32.totalorder %s1960_s13, %s1468_s30 }
 0x41b   : > { %p1471_p10 = scmp.lt.s32.totalorder %s1469_s29, %s1463_s10 }
 0x41d   : > { %v543_v43 = vpop.f32.mrb[4].mxu1  ;;  %p1472_p6 = por %p1471_p10, %p1470_p11 }
 0x41e   : > { %v549_v44 = vmul.f32 0.35355338, %v543_v43  ;;  %v1146_v45 = vpop.f32.mrb[5].mxu1  ;;  %v372_v43 = vadd.f32 %v1094_v42, %v364_v41 }
 0x41f   : > { %v546_v46 = vpop.f32.mrb[6].mxu1  ;;  %p1473_p8 = pnand %p1472_p6, %p1466_p3 }
 0x420   : > { %v1147_v47 = vpop.f32.mrb[7].mxu1  ;;  %v550_v48 = vsel %vm436_vm3, %v549_v44, -1e+09  ;;  %374 = vst.msk [vmem:[#allocation2] sm:$0xff] %vm373_vm5, %v372_v43 }
 0x421   : > { %v551_v49 = vsel %vm383_vm1, %v550_v48, -inf }
 0x422   : > { %552 = vmax.xlane.f32.xlu1 %v551_v49 }
 0x425   : > { %v655_v50 = vpop.f32.mrb[8].mxu1 }
 0x426   : > { %v661_v51 = vmul.f32 0.35355338, %v655_v50  ;;  %v1158_v52 = vpop.f32.mrb[9].mxu1 }
 0x427   : > { %v658_v53 = vpop.f32.mrb[10].mxu1 }
 0x428   : > { %v662_v54 = vsel %vm436_vm3, %v661_v51, -1e+09  ;;  %v1159_v55 = vpop.f32.mrb[11].mxu1 }
 0x429   : > { %v663_v56 = vsel %vm383_vm1, %v662_v54, -inf }
 0x42a   : > { %664 = vmax.xlane.f32.xlu0 %v663_v56 }
 0x42d   : > { %v767_v57 = vpop.f32.mrb[12].mxu1 }
 0x42e   : > { %v773_v58 = vmul.f32 0.35355338, %v767_v57  ;;  %v1170_v59 = vpop.f32.mrb[13].mxu1 }
 0x42f   : > { %v770_v60 = vpop.f32.mrb[14].mxu1 }
 0x430   : > { %v774_v61 = vsel %vm436_vm3, %v773_v58, -1e+09  ;;  %v1171_v62 = vpop.f32.mrb[15].mxu1  ;;  %v852_v58 = vld [vmem:[#allocation2] sm:$0xff] }
 0x431   : > { %v775_v63 = vsel %vm383_vm1, %v774_v61, -inf }
 0x432   : > { %776 = vmax.xlane.f32.xlu1 %v775_v63 }
 0x4af   : > { %v553_v1 = vpop.xlane.xlu1 %552 }
 0x4b0   : > { %v554_v3 = vsub.f32 %v550_v48, %v553_v1 }
 0x4b2   : > { %v555_v4 = vmul.f32 1.442695, %v554_v3 }
 0x4b4   : > { %1305 = vpow2.f32 %v555_v4 }
 0x4b7   : > { %v665_v12 = vpop.xlane.xlu0 %664 }
 0x4b8   : > { %v666_v13 = vsub.f32 %v662_v54, %v665_v12 }
 0x4ba   : > { %v667_v14 = vmul.f32 1.442695, %v666_v13 }
 0x4be   : > { %v1306_v5 = vpop.eup %1305 }
 0x4bf   : > { %v777_v6 = vpop.xlane.xlu1 %776  ;;  %v557_v7 = vsel %vm383_vm1, %v1306_v5, 0.0 }
 0x4c0   : > { %v778_v8 = vsub.f32 %v774_v61, %v777_v6  ;;  %558 = vadd.xlane.f32.xlu1 %v557_v7 }
 0x4c2   : > { %v779_v9 = vmul.f32 1.442695, %v778_v8 }
 0x4c4   : > { %1307 = vpow2.f32 %v779_v9 }
 0x4c5   : > { %1309 = vpow2.f32 %v667_v14 }
 0x4ce   : > { %v1308_v10 = vpop.eup %1307 }
 0x4cf   : > { %v781_v11 = vsel %vm383_vm1, %v1308_v10, 0.0  ;;  %v1310_v15 = vpop.eup %1309 }
 0x4d0   : > { %782 = vadd.xlane.f32.xlu0 %v781_v11  ;;  %v669_v16 = vsel %vm383_vm1, %v1310_v15, 0.0 }
 0x4d1   : > { %563 = vrot.lane.b32.xlu1 %v1874_v2, %s1573_s1 }
 0x4e6   : > { %675 = vrot.lane.b32.xlu0 %v1874_v2, %s1574_s17 }
 0x4f5   : > { %670 = vadd.xlane.f32.xlu1 %v669_v16 }
 0x506   : > { %787 = vrot.lane.b32.xlu1 %v1874_v2, %s1575_s14 }
 0x54d   : > { %v559_v17 = vpop.xlane.xlu1 %558 }
 0x54e   : > { %1311 = vrcp.f32 %v559_v17 }
 0x551   : > { %v564_v18 = vpop.permute.xlu1 %563 }
 0x552   : > { %v569_v19 = vsel %vm455_vm4, %v564_v18, 0 }
 0x553   : > { %1149 = vmatpush3.bf16.msra.mxu0 %v569_v19 }
 0x554   : > { %1160 = vmatprep.subr.bf16.mxu0 %v1562_v0 }
 0x558   : > { %v1312_v20 = vpop.eup %1311 }
 0x559   : > { %v561_v21 = vmul.f32 %v1312_v20, %v1306_v5 }
 0x55b   : > { %v562_v22 = vpack.c.bf16 %v561_v21, %v561_v21 }
 0x55d   : > { %1151 = vmatmul.mubr.msk.bf16.vlgmr.msra.gmra.mrb[4].mxu0 %vm383_vm1, %v562_v22  ;;  %v783_v23 = vpop.xlane.xlu0 %782 }
 0x55e   : > { %1162 = vmatprep.mubr.msk.bf16.mxu0 %vm1563_vm0, %v1562_v0 }
 0x561   : > { %v676_v24 = vpop.permute.xlu0 %675 }
 0x562   : > { %v681_v2 = vsel %vm455_vm4, %v676_v24, 0 }
 0x563   : > { %1161 = vmatpush3.bf16.msra.mxu0 %v681_v2 }
 0x564   : > { %1172 = vmatprep.subr.bf16.mxu0 %v1562_v0 }
 0x582   : > { %v671_v25 = vpop.xlane.xlu1 %670 }
 0x583   : > { %1313 = vrcp.f32 %v671_v25 }
 0x584   : > { %1315 = vrcp.f32 %v783_v23 }
 0x586   : > { %v788_v27 = vpop.permute.xlu1 %787 }
 0x587   : > { %v793_v29 = vsel %vm455_vm4, %v788_v27, 0 }
 0x58d   : > { %v1314_v26 = vpop.eup %1313 }
 0x58e   : > { %v673_v28 = vmul.f32 %v1314_v26, %v1310_v15  ;;  %v1316_v31 = vpop.eup %1315 }
 0x58f   : > { %v785_v32 = vmul.f32 %v1316_v31, %v1308_v10 }
 0x590   : > { %v674_v30 = vpack.c.bf16 %v673_v28, %v673_v28 }
 0x591   : > { %v786_v33 = vpack.c.bf16 %v785_v32, %v785_v32 }
 0x592   : > { %1163 = vmatmul.mubr.msk.bf16.vlgmr.msra.gmra.mrb[8].mxu0 %vm383_vm1, %v674_v30 }
 0x593   : > { %1173 = vmatpush3.bf16.msra.mxu0 %v793_v29  ;;  %1174 = vmatprep.mubr.msk.bf16.mxu0 %vm1563_vm0, %v1562_v0 }
 0x59a   : > { %1175 = vmatmul.mubr.msk.bf16.vlgmr.msra.gmra.mrb[12].mxu0 %vm383_vm1, %v786_v33 }
 0x630   : > { %v605_v34 = vpop.f32.mrb[4].mxu0 }
 0x631   : > { %836 = vrot.lane.b32.xlu1 %v605_v34, %s1576_s6  ;;  %v1152_v35 = vpop.f32.mrb[5].mxu0 }
 0x632   : > { %v608_v36 = vpop.f32.mrb[6].mxu0 }
 0x633   : > { %v1153_v37 = vpop.f32.mrb[7].mxu0 }
 0x665   : > { %v717_v44 = vpop.f32.mrb[8].mxu0 }
 0x666   : > { %840 = vrot.lane.b32.xlu0 %v717_v44, %s1577_s28  ;;  %v1164_v45 = vpop.f32.mrb[9].mxu0 }
 0x667   : > { %v720_v46 = vpop.f32.mrb[10].mxu0 }
 0x668   : > { %v1165_v47 = vpop.f32.mrb[11].mxu0 }
 0x66d   : > { %v829_v48 = vpop.f32.mrb[12].mxu0 }
 0x66e   : > { %844 = vrot.lane.b32.xlu1 %v829_v48, %s1578_s8  ;;  %v1176_v49 = vpop.f32.mrb[13].mxu0 }
 0x66f   : > { %v832_v50 = vpop.f32.mrb[14].mxu0 }
 0x670   : > { %v1177_v51 = vpop.f32.mrb[15].mxu0 }
 0x6a3   : > { %v837_v0 = vpop.permute.xlu1 %836 }
 0x6a4   : > { %v847_v53 = vsel %vm383_vm1, %v1916_v39, %v837_v0 }
 0x6d8   : > { %v841_v52 = vpop.permute.xlu0 %840 }
 0x6d9   : > { %v849_v54 = vsel %vm848_vm6, %v847_v53, %v841_v52 }
 0x6e0   : > { %v845_v55 = vpop.permute.xlu1 %844 }
 0x6e1   : > { %v851_v56 = vsel %vm850_vm7, %v849_v54, %v845_v55 }
 0x6e2   : > { %v853_v57 = vpack.c.bf16 %v851_v56, %v851_v56 }
 0x6e4   : > { %1183 = vmatmul.mubr.msk.bf16.vlgmr.msra.gmra.mrb[16].mxu1 %vm373_vm5, %v853_v57 }
 0x7b7   : > { %v908_v59 = vpop.f32.mrb[16].mxu1 }
 0x7b8   : > { %v914_v60 = vadd.f32 %v908_v59, %v852_v58  ;;  %v1184_v61 = vpop.f32.mrb[17].mxu1 }
 0x7b9   : > { %v911_v62 = vpop.f32.mrb[18].mxu1 }
 0x7ba   : > { %915 = vst.msk [vmem:[#allocation2] sm:$0xff] %vm373_vm5, %v914_v60  ;;  %v1185_v63 = vpop.f32.mrb[19].mxu1 }
 0x7c1   : > { %v919_v39 = vld [vmem:[#allocation2] sm:$0xff] }
 0x7c2   : > { %v920_v1 = vpack.c.bf16 %v919_v39, %v919_v39 }
 0x7c4   : > { %922 = vst.msk [vmem:[%s357_s3] sm:$0xf] %vm921_vm8, %v920_v1 }
 0x7c5   : > { %1476 = shalt.err (!%p1473_p8)
}
 0x7c6   : > { %s1477_s16 = scalar_lea.hbm %s1958_s12, 64  ;;  %s1481_s1 = scalar_lea.hbm %s2012_s5, 128 }
 0x7c7   : > { %p1478_p0 = scmp.ne.s32.totalorder %s1958_s12, %s1477_s16  ;;  %p1482_p7 = scmp.lt.u32.totalorder %s1958_s12, %s2012_s5 }
 0x7c8   : > { %p1483_p13 = scmp.lt.u32.totalorder %s1481_s1, %s1477_s16  ;;  %p1485_p2 = scmp.lt.u32.totalorder %s1477_s16, %s1958_s12 }
 0x7c9   : > { %p1479_p5 = pnand %p1478_p0, %p2049_p4 }
 0x7ca   : > { %p1484_p9 = por %p1483_p13, %p1482_p7 }
 0x7cb   : > { %p1480_p12 = pneg %p1479_p5 }
 0x7cc   : > { %p1486_p1 = por %p1485_p2, %p1484_p9 }
 0x7ce   : > { %p1487_p3 = pnand %p1486_p1, %p1480_p12 }
 0x7d0   : > { %1490 = shalt.err (!%p1487_p3)
}
 0x7d1   : > { %1200 = dma.vmem_to_hbm [thread:$0]  (%p2049_p4), %s1960_s13, 64, %s1958_s12, %s924_s15  }
 0x7d2 PF: > { %s949_s6 = sand.u32 1, %s1533_s18   ;;  %p2050_p11 = scmp.ne.s32.totalorder %s2028_s27, 0 }
 0x7d3   : > { %p2051_p10 = scmp.ge.s32.totalorder %s1553_s23, 2  ;;  %s950_s28 = scalar_lea.sflag [#allocation5], %s949_s6 }
 0x7d5   : > { %p1220_p6 = pnand %p2051_p10, %p2050_p11 }
 0x7d7   : > { %1528 = dma.done.wait (!%p1220_p6), %s950_s28, 64  }
 0x7d8   : > { %1530 = vsyncadd (!%p1220_p6), %s950_s28, 4294967232  ;;  %s25_s23 = sadd.s32 1, %s1553_s23   ;;  %s2052_s9 = sld [smem:[#allocation18_spill]] }
 0x7d9   : > { %p22_p8 = scmp.ge.s32.totalorder %s25_s23, 4   ;;  %s2053_s8 = sld [smem:[#allocation17_spill]] }
 0x7da   : > { %s2054_s18 = smov %s1537_s19  ;;  %s2055_s19 = smov %s1541_s20 }
 0x7db   : > { %s2057_s21 = smov %s1549_s22  ;;  %24 = sbr.rel (!%p22_p8) target bundleno = 12 (0xc), region = 126 }
 0x7de   : > { %s2056_s20 = smov %s2052_s9 }
 0x7df   : > { %s2058_s22 = smov %s2053_s8 }
 0x7e2   :  { %955 = vsyncpa [#allocation4], 1 }
 0x7e3   :  { %957 = vsyncpa [#allocation4 + $0x1], 1 }
 0x7e4   :  { %958 = vsyncpa [#allocation7], 1 }
 0x7e5   :  { %960 = vsyncpa [#allocation7 + $0x1], 1 }
 0x7e6   :  { %961 = vsyncpa [#allocation10], 1 }
 0x7e7   :  { %962 = vsyncpa [#allocation5], 1 }
 0x7e8   :  { %964 = vsyncpa [#allocation5 + $0x1], 1 }

</bundles_post_ra>
